<compile_context>
chip_gen: v5e
topology: v5e:2x2
jax: 0.10.0
libtpu: 0.0.40
codegen_flags: <defaults>
</compile_context>

<pallas_src>
import functools

import jax
import jax.numpy as jnp
import numpy as np
from jax import lax
from jax.experimental import pallas as pl
from jax.experimental.pallas import tpu as pltpu


# ----------------------------------------------------------------------------
# Pallas kernel
# ----------------------------------------------------------------------------
def encdec_lstm_kernel(x_ref, we_ih_ref, we_hh_ref, wd_ih_ref, wd_hh_ref,
                       w1_ref, w2_ref, out_ref,
                       xg_ref, dec_ref, *, S, B, B_out):
    """All weights arrive bf16, pre-transposed so gates = x @ W, with gate
    columns permuted to (i, f, o, g).

    x_ref   : (S*B, I)    bf16, row = t*B + b (time-major, batch padded to 8k)
    we_ih   : (I, 4He)    we_hh : (He, 4He)
    wd_ih   : (He, 4Hd)   wd_hh : (Hd, 4Hd)
    w1      : (S*Hd, F)   (fc1 weight transposed; row index = s*Hd + h)
    w2      : (F, O)
    out     : (B_out, O)  f32  (unpadded batch emitted directly)
    scratch : xg (S*B, 4He) f32 | dec (B, S*Hd) bf16
    """
    He = we_hh_ref.shape[0]
    Hd = wd_hh_ref.shape[0]

    we_hh = we_hh_ref[...]          # (He, 4He) bf16
    wd_ih = wd_ih_ref[...]          # (He, 4Hd) bf16
    wd_hh = wd_hh_ref[...]          # (Hd, 4Hd) bf16

    # ---- encoder x-side gates for every timestep: one big MXU pass, fully
    # off the serial recurrence path --------------------------------------
    xg_ref[...] = jnp.dot(x_ref[...], we_ih_ref[...],
                          preferred_element_type=jnp.float32)       # (S*B,4He)

    def cell(xgates, h, c, w_hh, H):
        # Only the h-side matmul + gate math sit on the serial path.
        gates = xgates + jnp.dot(h.astype(jnp.bfloat16), w_hh,
                                 preferred_element_type=jnp.float32)
        # Gate order (i, f, o, g): sigmoid over 3H lanes, tanh over H lanes
        # (half the EUP work of sigmoid(4H)+tanh(4H)).
        sig = jax.nn.sigmoid(gates[:, :3 * H])
        g_g = jnp.tanh(gates[:, 3 * H:])
        i_g = sig[:, 0 * H:1 * H]
        f_g = sig[:, 1 * H:2 * H]
        o_g = sig[:, 2 * H:3 * H]
        c_new = f_g * c + i_g * g_g
        h_new = o_g * jnp.tanh(c_new)
        return h_new, c_new

    # ---- interleaved encoder + decoder recurrence ------------------------
    # Fully unrolled (S is small & static) so every slice/store offset below
    # is a compile-time constant; decoder step t overlaps encoder step t+1.
    # TODO(synk): for very large seq_length switch to lax.fori_loop with
    # partial unroll and a (S, B, Hd) dec layout (dynamic first-axis stores).
    he = jnp.zeros((B, He), jnp.float32)
    ce = jnp.zeros((B, He), jnp.float32)
    hd = jnp.zeros((B, Hd), jnp.float32)
    cd = jnp.zeros((B, Hd), jnp.float32)

    for t in range(S):
        # encoder step t
        he, ce = cell(xg_ref[t * B:(t + 1) * B, :], he, ce, we_hh, He)
        # decoder x-side gates for step t: depends only on he_t -> MXU filler
        # that the scheduler hides under the next encoder step.
        dg_t = jnp.dot(he.astype(jnp.bfloat16), wd_ih,
                       preferred_element_type=jnp.float32)           # (B,4Hd)
        # decoder step t
        hd, cd = cell(dg_t, hd, cd, wd_hh, Hd)
        # flat (flatten-compatible) bf16 store: column index = t*Hd + h
        dec_ref[:, t * Hd:(t + 1) * Hd] = hd.astype(jnp.bfloat16)

    # ---- FC head: ONE K = S*Hd contraction (no (S,B,F) partial, no axis-0
    # reduce), then ReLU, then fc2 -----------------------------------------
    y = jnp.dot(dec_ref[...], w1_ref[...],
                preferred_element_type=jnp.float32)                   # (B, F)
    y = jnp.maximum(y, 0.0)
    out = jnp.dot(y.astype(jnp.bfloat16), w2_ref[...],
                  preferred_element_type=jnp.float32)                 # (B, O)
    out_ref[...] = out[:B_out, :]                                     # unpad


# ----------------------------------------------------------------------------
# Generation-aware VMEM capacity (v5e/v6e: 128 MiB, v7x: 64 MiB per TC)
# ----------------------------------------------------------------------------
@functools.lru_cache(maxsize=None)
def _vmem_cap_bytes():
    try:
        info = pltpu.get_tpu_info()
        cap = getattr(info, "vmem_capacity_bytes", None)
        if cap:
            return int(cap)
    except Exception:
        pass
    return 64 * 2 ** 20  # conservative fallback (v7x per-TC VMEM)


# ----------------------------------------------------------------------------
# Host wrapper
# ----------------------------------------------------------------------------
@functools.partial(jax.jit, static_argnames=("steps", "output_size"))
def encoder_decoder_lstm(x, prepped, *, steps=1, output_size=1):
    """x: (B, S, I) batch-first f32, like the PyTorch module. prepped: see
    prepare_params()."""
    B, S, I = x.shape
    we_ih, we_hh, wd_ih, wd_hh, w1_T, w2_T = prepped
    He = we_hh.shape[0]
    Hd = wd_hh.shape[0]
    O = steps * output_size

    # Pad batch to a multiple of 8 (f32 sublane height). Padded rows stay
    # exactly zero (biases are zero), and the kernel emits only the first B
    # rows, so padding never leaks.  The pad/transpose/reshape/cast below is
    # fused by XLA into a single cheap layout op under jit.
    Bp = max(8, ((B + 7) // 8) * 8)
    if Bp != B:
        x = jnp.concatenate([x, jnp.zeros((Bp - B, S, I), x.dtype)], axis=0)
    x2d = jnp.transpose(x, (1, 0, 2)).reshape(S * Bp, I).astype(jnp.bfloat16)

    def nbytes(a):
        return a.size * a.dtype.itemsize

    scratch = [
        pltpu.VMEM((S * Bp, 4 * He), jnp.float32),   # encoder x-side gates
        pltpu.VMEM((Bp, S * Hd), jnp.bfloat16),      # decoder hiddens (flat)
    ]
    resident = (nbytes(x2d)
                + sum(nbytes(w) for w in prepped)
                + 4 * (S * Bp * 4 * He)              # xg scratch (f32)
                + 2 * (Bp * S * Hd)                  # dec scratch (bf16)
                + 4 * B * O)
    cap = _vmem_cap_bytes()
    vmem_limit = int(min(int(0.85 * cap), max(32 * 2 ** 20, 2 * resident)))

    vmem = pl.BlockSpec(memory_space=pltpu.MemorySpace.VMEM)
    out = pl.pallas_call(
        functools.partial(encdec_lstm_kernel, S=S, B=Bp, B_out=B),
        out_shape=jax.ShapeDtypeStruct((B, O), jnp.float32),
        in_specs=[vmem] * 7,
        out_specs=vmem,
        scratch_shapes=scratch,
        compiler_params=pltpu.CompilerParams(vmem_limit_bytes=vmem_limit),
    )(x2d, we_ih, we_hh, wd_ih, wd_hh, w1_T, w2_T)
    # TODO(synk): for large batches add a batch-tiled grid with
    # dimension_semantics=("parallel",) to use v7x's 2nd TensorCore, and
    # stream w1 from HBM (pl.ANY + make_async_copy) once S*Hd*F outgrows VMEM.
    return out


# ----------------------------------------------------------------------------
# Parameter init (mirrors the PyTorch module's init_weights) + one-time prep
# ----------------------------------------------------------------------------
def _orthogonal(key, shape):
    r, c = shape
    a = jax.random.normal(key, (max(r, c), min(r, c)), jnp.float32)
    q, _ = jnp.linalg.qr(a)
    q = q if r >= c else q.T
    return q[:r, :c].astype(jnp.float32)


def _kaiming(key, shape):
    fan_in = shape[1]
    return (jax.random.normal(key, shape, jnp.float32)
            * jnp.sqrt(2.0 / fan_in)).astype(jnp.float32)


def init_params(key, input_size, seq_length, enc_hidden, dec_hidden,
                fc_hidden, steps, output_size):
    """Canonical f32 params in PyTorch layout (biases are zero -> omitted)."""
    ks = jax.random.split(key, 6)
    we_ih = _orthogonal(ks[0], (4 * enc_hidden, input_size))     # LSTM weight_ih
    we_hh = _orthogonal(ks[1], (4 * enc_hidden, enc_hidden))     # LSTM weight_hh
    wd_ih = _orthogonal(ks[2], (4 * dec_hidden, enc_hidden))
    wd_hh = _orthogonal(ks[3], (4 * dec_hidden, dec_hidden))
    w1 = _kaiming(ks[4], (fc_hidden, dec_hidden * seq_length))   # fc[0]
    w2 = _kaiming(ks[5], (steps * output_size, fc_hidden))       # fc[-1]
    return (we_ih, we_hh, wd_ih, wd_hh, w1, w2)


def prepare_params(params):
    """One-time layout + bf16 prep (hoisted out of the per-call forward):
    transpose LSTM weights so gates = x @ W, permute gate columns from
    PyTorch's (i, f, g, o) to (i, f, o, g), transpose FC weights."""
    we_ih, we_hh, wd_ih, wd_hh, w1, w2 = params
    He = we_hh.shape[1]
    Hd = wd_hh.shape[1]
    bf = jnp.bfloat16

    def prep_lstm(w, H):
        wT = w.T                                     # (in, 4H), cols [i|f|g|o]
        wT = jnp.concatenate([wT[:, :2 * H],         # i, f
                              wT[:, 3 * H:],         # o
                              wT[:, 2 * H:3 * H]],   # g
                             axis=1)                 # -> [i|f|o|g]
        return wT.astype(bf)

    return (prep_lstm(we_ih, He), prep_lstm(we_hh, He),
            prep_lstm(wd_ih, Hd), prep_lstm(wd_hh, Hd),
            w1.T.astype(bf),                         # (S*Hd, F), row = s*Hd+h
            w2.T.astype(bf))                         # (F, O)


# ----------------------------------------------------------------------------
# Pure-JAX f32 reference (same math as the PyTorch forward, dropout=0)
# ----------------------------------------------------------------------------
def _lstm_ref(x_bf, w_ih_T, w_hh_T, H):
    B = x_bf.shape[0]

    def step(carry, x_t):
        h, c = carry
        gates = x_t @ w_ih_T + h @ w_hh_T
        i = jax.nn.sigmoid(gates[:, :H])
        f = jax.nn.sigmoid(gates[:, H:2 * H])
        g = jnp.tanh(gates[:, 2 * H:3 * H])
        o = jax.nn.sigmoid(gates[:, 3 * H:])
        c = f * c + i * g
        h = o * jnp.tanh(c)
        return (h, c), h

    z = jnp.zeros((B, H), jnp.float32)
    _, hs = lax.scan(step, (z, z), jnp.swapaxes(x_bf, 0, 1))
    return jnp.swapaxes(hs, 0, 1)


def reference(x, params):
    we_ih, we_hh, wd_ih, wd_hh, w1, w2 = params
    He, Hd = we_hh.shape[1], wd_hh.shape[1]
    enc = _lstm_ref(x, we_ih.T, we_hh.T, He)
    dec = _lstm_ref(enc, wd_ih.T, wd_hh.T, Hd)
    flat = dec.reshape(x.shape[0], -1)                 # flatten(start_dim=1)
    y = jnp.maximum(flat @ w1.T, 0.0)
    return y @ w2.T


# ----------------------------------------------------------------------------
if __name__ == "__main__":
    # Small shapes consistent with the module defaults.
    B, S, I = 2, 8, 4
    He = Hd = 64
    F = 64
    steps, output_size = 1, 1

    key = jax.random.PRNGKey(0)
    kx, kp = jax.random.split(key)
    x = jax.random.normal(kx, (B, S, I), jnp.float32)
    params = init_params(kp, I, S, He, Hd, F, steps, output_size)
    prepped = prepare_params(params)        # one-time (NOT per forward call)

    out = encoder_decoder_lstm(x, prepped, steps=steps, output_size=output_size)
    out = jax.block_until_ready(out)

    ref = reference(x, params)
    # bf16 MXU operands (f32 accumulation) vs. the pure-f32 reference ->
    # loosened tolerance relative to an all-f32 kernel.
    np.testing.assert_allclose(np.asarray(out), np.asarray(ref),
                               rtol=5e-2, atol=1e-3)
    assert out.shape == (B, steps * output_size)

    print("KERNEL_OK")
</pallas_src>

<mosaic_0001>
module attributes {stable_mosaic.version = 11 : i64} {
  func.func @encdec_lstm_kernel(%arg0: memref<64x4xbf16, #tpu.memory_space<vmem>>, %arg1: memref<4x256xbf16, #tpu.memory_space<vmem>>, %arg2: memref<64x256xbf16, #tpu.memory_space<vmem>>, %arg3: memref<64x256xbf16, #tpu.memory_space<vmem>>, %arg4: memref<64x256xbf16, #tpu.memory_space<vmem>>, %arg5: memref<512x64xbf16, #tpu.memory_space<vmem>>, %arg6: memref<64x1xbf16, #tpu.memory_space<vmem>>, %arg7: memref<2x1xf32, #tpu.memory_space<vmem>>, %arg8: memref<64x256xf32, #tpu.memory_space<vmem>>, %arg9: memref<8x512xbf16, #tpu.memory_space<vmem>>) attributes {dimension_semantics = [], scalar_prefetch = 0 : i64, scratch_operands = 2 : i64, tpu.core_type = #tpu.core_type<tc>} {
    %c0 = arith.constant 0 : index
    %c0_0 = arith.constant 0 : index
    %0 = vector.load %arg2[%c0, %c0_0] : memref<64x256xbf16, #tpu.memory_space<vmem>>, vector<64x256xbf16>
    %c0_1 = arith.constant 0 : index
    %c0_2 = arith.constant 0 : index
    %1 = vector.load %arg3[%c0_1, %c0_2] : memref<64x256xbf16, #tpu.memory_space<vmem>>, vector<64x256xbf16>
    %c0_3 = arith.constant 0 : index
    %c0_4 = arith.constant 0 : index
    %2 = vector.load %arg4[%c0_3, %c0_4] : memref<64x256xbf16, #tpu.memory_space<vmem>>, vector<64x256xbf16>
    %c0_5 = arith.constant 0 : index
    %c0_6 = arith.constant 0 : index
    %3 = vector.load %arg0[%c0_5, %c0_6] : memref<64x4xbf16, #tpu.memory_space<vmem>>, vector<64x4xbf16>
    %c0_7 = arith.constant 0 : index
    %c0_8 = arith.constant 0 : index
    %4 = vector.load %arg1[%c0_7, %c0_8] : memref<4x256xbf16, #tpu.memory_space<vmem>>, vector<4x256xbf16>
    %cst = arith.constant dense<0.000000e+00> : vector<64x256xf32>
    %5 = tpu.matmul %3, %4, %cst {dimension_numbers = #tpu.dot_dimension_numbers<[1], [0], [0], [1], [0, 0, 1, 1], [], []>} : vector<64x4xbf16>, vector<4x256xbf16>, vector<64x256xf32> -> vector<64x256xf32>
    %c0_9 = arith.constant 0 : index
    %c0_10 = arith.constant 0 : index
    %6 = vector.load %arg8[%c0_9, %c0_10] : memref<64x256xf32, #tpu.memory_space<vmem>>, vector<64x256xf32>
    tpu.vector_store %arg8[%c0_9, %c0_10], %5 {strides = array<i32>} : memref<64x256xf32, #tpu.memory_space<vmem>>, vector<64x256xf32>,
    %cst_11 = arith.constant 0.000000e+00 : f32
    %7 = vector.broadcast %cst_11 : f32 to vector<8x64xf32>
    %cst_12 = arith.constant 0.000000e+00 : f32
    %8 = vector.broadcast %cst_12 : f32 to vector<8x64xf32>
    %cst_13 = arith.constant 0.000000e+00 : f32
    %9 = vector.broadcast %cst_13 : f32 to vector<8x64xf32>
    %cst_14 = arith.constant 0.000000e+00 : f32
    %10 = vector.broadcast %cst_14 : f32 to vector<8x64xf32>
    %c0_15 = arith.constant 0 : index
    %c0_16 = arith.constant 0 : index
    %11 = vector.load %arg8[%c0_15, %c0_16] : memref<64x256xf32, #tpu.memory_space<vmem>>, vector<8x256xf32>
    %12 = arith.truncf %7 : vector<8x64xf32> to vector<8x64xbf16>
    %cst_17 = arith.constant dense<0.000000e+00> : vector<8x256xf32>
    %13 = tpu.matmul %12, %0, %cst_17 {dimension_numbers = #tpu.dot_dimension_numbers<[1], [0], [0], [1], [0, 0, 1, 1], [], []>} : vector<8x64xbf16>, vector<64x256xbf16>, vector<8x256xf32> -> vector<8x256xf32>
    %14 = arith.addf %11, %13 : vector<8x256xf32>
    %15 = vector.extract_strided_slice %14 {offsets = [0, 0], sizes = [8, 192], strides = [1, 1]} : vector<8x256xf32> to vector<8x192xf32>
    %16 = arith.negf %15 : vector<8x192xf32>
    %17 = math.exp %16 : vector<8x192xf32>
    %cst_18 = arith.constant 1.000000e+00 : f32
    %18 = vector.broadcast %cst_18 : f32 to vector<8x192xf32>
    %19 = arith.addf %18, %17 : vector<8x192xf32>
    %20 = arith.divf %18, %19 : vector<8x192xf32>
    %21 = vector.extract_strided_slice %14 {offsets = [0, 192], sizes = [8, 64], strides = [1, 1]} : vector<8x256xf32> to vector<8x64xf32>
    %22 = math.tanh %21 : vector<8x64xf32>
    %23 = vector.extract_strided_slice %20 {offsets = [0, 0], sizes = [8, 64], strides = [1, 1]} : vector<8x192xf32> to vector<8x64xf32>
    %24 = vector.extract_strided_slice %20 {offsets = [0, 64], sizes = [8, 64], strides = [1, 1]} : vector<8x192xf32> to vector<8x64xf32>
    %25 = vector.extract_strided_slice %20 {offsets = [0, 128], sizes = [8, 64], strides = [1, 1]} : vector<8x192xf32> to vector<8x64xf32>
    %26 = arith.mulf %24, %8 : vector<8x64xf32>
    %27 = arith.mulf %23, %22 : vector<8x64xf32>
    %28 = arith.addf %26, %27 : vector<8x64xf32>
    %29 = math.tanh %28 : vector<8x64xf32>
    %30 = arith.mulf %25, %29 : vector<8x64xf32>
    %31 = arith.truncf %30 : vector<8x64xf32> to vector<8x64xbf16>
    %cst_19 = arith.constant dense<0.000000e+00> : vector<8x256xf32>
    %32 = tpu.matmul %31, %1, %cst_19 {dimension_numbers = #tpu.dot_dimension_numbers<[1], [0], [0], [1], [0, 0, 1, 1], [], []>} : vector<8x64xbf16>, vector<64x256xbf16>, vector<8x256xf32> -> vector<8x256xf32>
    %33 = arith.truncf %9 : vector<8x64xf32> to vector<8x64xbf16>
    %cst_20 = arith.constant dense<0.000000e+00> : vector<8x256xf32>
    %34 = tpu.matmul %33, %2, %cst_20 {dimension_numbers = #tpu.dot_dimension_numbers<[1], [0], [0], [1], [0, 0, 1, 1], [], []>} : vector<8x64xbf16>, vector<64x256xbf16>, vector<8x256xf32> -> vector<8x256xf32>
    %35 = arith.addf %32, %34 : vector<8x256xf32>
    %36 = vector.extract_strided_slice %35 {offsets = [0, 0], sizes = [8, 192], strides = [1, 1]} : vector<8x256xf32> to vector<8x192xf32>
    %37 = arith.negf %36 : vector<8x192xf32>
    %38 = math.exp %37 : vector<8x192xf32>
    %cst_21 = arith.constant 1.000000e+00 : f32
    %39 = vector.broadcast %cst_21 : f32 to vector<8x192xf32>
    %40 = arith.addf %39, %38 : vector<8x192xf32>
    %41 = arith.divf %39, %40 : vector<8x192xf32>
    %42 = vector.extract_strided_slice %35 {offsets = [0, 192], sizes = [8, 64], strides = [1, 1]} : vector<8x256xf32> to vector<8x64xf32>
    %43 = math.tanh %42 : vector<8x64xf32>
    %44 = vector.extract_strided_slice %41 {offsets = [0, 0], sizes = [8, 64], strides = [1, 1]} : vector<8x192xf32> to vector<8x64xf32>
    %45 = vector.extract_strided_slice %41 {offsets = [0, 64], sizes = [8, 64], strides = [1, 1]} : vector<8x192xf32> to vector<8x64xf32>
    %46 = vector.extract_strided_slice %41 {offsets = [0, 128], sizes = [8, 64], strides = [1, 1]} : vector<8x192xf32> to vector<8x64xf32>
    %47 = arith.mulf %45, %10 : vector<8x64xf32>
    %48 = arith.mulf %44, %43 : vector<8x64xf32>
    %49 = arith.addf %47, %48 : vector<8x64xf32>
    %50 = math.tanh %49 : vector<8x64xf32>
    %51 = arith.mulf %46, %50 : vector<8x64xf32>
    %52 = arith.truncf %51 : vector<8x64xf32> to vector<8x64xbf16>
    %c0_22 = arith.constant 0 : index
    %c0_23 = arith.constant 0 : index
    %53 = vector.load %arg9[%c0_22, %c0_23] : memref<8x512xbf16, #tpu.memory_space<vmem>>, vector<8x64xbf16>
    tpu.vector_store %arg9[%c0_22, %c0_23], %52 {strides = array<i32>} : memref<8x512xbf16, #tpu.memory_space<vmem>>, vector<8x64xbf16>,
    %c8 = arith.constant 8 : index
    %c0_24 = arith.constant 0 : index
    %54 = vector.load %arg8[%c8, %c0_24] : memref<64x256xf32, #tpu.memory_space<vmem>>, vector<8x256xf32>
    %55 = arith.truncf %30 : vector<8x64xf32> to vector<8x64xbf16>
    %cst_25 = arith.constant dense<0.000000e+00> : vector<8x256xf32>
    %56 = tpu.matmul %55, %0, %cst_25 {dimension_numbers = #tpu.dot_dimension_numbers<[1], [0], [0], [1], [0, 0, 1, 1], [], []>} : vector<8x64xbf16>, vector<64x256xbf16>, vector<8x256xf32> -> vector<8x256xf32>
    %57 = arith.addf %54, %56 : vector<8x256xf32>
    %58 = vector.extract_strided_slice %57 {offsets = [0, 0], sizes = [8, 192], strides = [1, 1]} : vector<8x256xf32> to vector<8x192xf32>
    %59 = arith.negf %58 : vector<8x192xf32>
    %60 = math.exp %59 : vector<8x192xf32>
    %cst_26 = arith.constant 1.000000e+00 : f32
    %61 = vector.broadcast %cst_26 : f32 to vector<8x192xf32>
    %62 = arith.addf %61, %60 : vector<8x192xf32>
    %63 = arith.divf %61, %62 : vector<8x192xf32>
    %64 = vector.extract_strided_slice %57 {offsets = [0, 192], sizes = [8, 64], strides = [1, 1]} : vector<8x256xf32> to vector<8x64xf32>
    %65 = math.tanh %64 : vector<8x64xf32>
    %66 = vector.extract_strided_slice %63 {offsets = [0, 0], sizes = [8, 64], strides = [1, 1]} : vector<8x192xf32> to vector<8x64xf32>
    %67 = vector.extract_strided_slice %63 {offsets = [0, 64], sizes = [8, 64], strides = [1, 1]} : vector<8x192xf32> to vector<8x64xf32>
    %68 = vector.extract_strided_slice %63 {offsets = [0, 128], sizes = [8, 64], strides = [1, 1]} : vector<8x192xf32> to vector<8x64xf32>
    %69 = arith.mulf %67, %28 : vector<8x64xf32>
    %70 = arith.mulf %66, %65 : vector<8x64xf32>
    %71 = arith.addf %69, %70 : vector<8x64xf32>
    %72 = math.tanh %71 : vector<8x64xf32>
    %73 = arith.mulf %68, %72 : vector<8x64xf32>
    %74 = arith.truncf %73 : vector<8x64xf32> to vector<8x64xbf16>
    %cst_27 = arith.constant dense<0.000000e+00> : vector<8x256xf32>
    %75 = tpu.matmul %74, %1, %cst_27 {dimension_numbers = #tpu.dot_dimension_numbers<[1], [0], [0], [1], [0, 0, 1, 1], [], []>} : vector<8x64xbf16>, vector<64x256xbf16>, vector<8x256xf32> -> vector<8x256xf32>
    %76 = arith.truncf %51 : vector<8x64xf32> to vector<8x64xbf16>
    %cst_28 = arith.constant dense<0.000000e+00> : vector<8x256xf32>
    %77 = tpu.matmul %76, %2, %cst_28 {dimension_numbers = #tpu.dot_dimension_numbers<[1], [0], [0], [1], [0, 0, 1, 1], [], []>} : vector<8x64xbf16>, vector<64x256xbf16>, vector<8x256xf32> -> vector<8x256xf32>
    %78 = arith.addf %75, %77 : vector<8x256xf32>
    %79 = vector.extract_strided_slice %78 {offsets = [0, 0], sizes = [8, 192], strides = [1, 1]} : vector<8x256xf32> to vector<8x192xf32>
    %80 = arith.negf %79 : vector<8x192xf32>
    %81 = math.exp %80 : vector<8x192xf32>
    %cst_29 = arith.constant 1.000000e+00 : f32
    %82 = vector.broadcast %cst_29 : f32 to vector<8x192xf32>
    %83 = arith.addf %82, %81 : vector<8x192xf32>
    %84 = arith.divf %82, %83 : vector<8x192xf32>
    %85 = vector.extract_strided_slice %78 {offsets = [0, 192], sizes = [8, 64], strides = [1, 1]} : vector<8x256xf32> to vector<8x64xf32>
    %86 = math.tanh %85 : vector<8x64xf32>
    %87 = vector.extract_strided_slice %84 {offsets = [0, 0], sizes = [8, 64], strides = [1, 1]} : vector<8x192xf32> to vector<8x64xf32>
    %88 = vector.extract_strided_slice %84 {offsets = [0, 64], sizes = [8, 64], strides = [1, 1]} : vector<8x192xf32> to vector<8x64xf32>
    %89 = vector.extract_strided_slice %84 {offsets = [0, 128], sizes = [8, 64], strides = [1, 1]} : vector<8x192xf32> to vector<8x64xf32>
    %90 = arith.mulf %88, %49 : vector<8x64xf32>
    %91 = arith.mulf %87, %86 : vector<8x64xf32>
    %92 = arith.addf %90, %91 : vector<8x64xf32>
    %93 = math.tanh %92 : vector<8x64xf32>
    %94 = arith.mulf %89, %93 : vector<8x64xf32>
    %95 = arith.truncf %94 : vector<8x64xf32> to vector<8x64xbf16>
    %c0_30 = arith.constant 0 : index
    %c64 = arith.constant 64 : index
    %96 = vector.load %arg9[%c0_30, %c64] : memref<8x512xbf16, #tpu.memory_space<vmem>>, vector<8x64xbf16>
    tpu.vector_store %arg9[%c0_30, %c64], %95 {strides = array<i32>} : memref<8x512xbf16, #tpu.memory_space<vmem>>, vector<8x64xbf16>,
    %c16 = arith.constant 16 : index
    %c0_31 = arith.constant 0 : index
    %97 = vector.load %arg8[%c16, %c0_31] : memref<64x256xf32, #tpu.memory_space<vmem>>, vector<8x256xf32>
    %98 = arith.truncf %73 : vector<8x64xf32> to vector<8x64xbf16>
    %cst_32 = arith.constant dense<0.000000e+00> : vector<8x256xf32>
    %99 = tpu.matmul %98, %0, %cst_32 {dimension_numbers = #tpu.dot_dimension_numbers<[1], [0], [0], [1], [0, 0, 1, 1], [], []>} : vector<8x64xbf16>, vector<64x256xbf16>, vector<8x256xf32> -> vector<8x256xf32>
    %100 = arith.addf %97, %99 : vector<8x256xf32>
    %101 = vector.extract_strided_slice %100 {offsets = [0, 0], sizes = [8, 192], strides = [1, 1]} : vector<8x256xf32> to vector<8x192xf32>
    %102 = arith.negf %101 : vector<8x192xf32>
    %103 = math.exp %102 : vector<8x192xf32>
    %cst_33 = arith.constant 1.000000e+00 : f32
    %104 = vector.broadcast %cst_33 : f32 to vector<8x192xf32>
    %105 = arith.addf %104, %103 : vector<8x192xf32>
    %106 = arith.divf %104, %105 : vector<8x192xf32>
    %107 = vector.extract_strided_slice %100 {offsets = [0, 192], sizes = [8, 64], strides = [1, 1]} : vector<8x256xf32> to vector<8x64xf32>
    %108 = math.tanh %107 : vector<8x64xf32>
    %109 = vector.extract_strided_slice %106 {offsets = [0, 0], sizes = [8, 64], strides = [1, 1]} : vector<8x192xf32> to vector<8x64xf32>
    %110 = vector.extract_strided_slice %106 {offsets = [0, 64], sizes = [8, 64], strides = [1, 1]} : vector<8x192xf32> to vector<8x64xf32>
    %111 = vector.extract_strided_slice %106 {offsets = [0, 128], sizes = [8, 64], strides = [1, 1]} : vector<8x192xf32> to vector<8x64xf32>
    %112 = arith.mulf %110, %71 : vector<8x64xf32>
    %113 = arith.mulf %109, %108 : vector<8x64xf32>
    %114 = arith.addf %112, %113 : vector<8x64xf32>
    %115 = math.tanh %114 : vector<8x64xf32>
    %116 = arith.mulf %111, %115 : vector<8x64xf32>
    %117 = arith.truncf %116 : vector<8x64xf32> to vector<8x64xbf16>
    %cst_34 = arith.constant dense<0.000000e+00> : vector<8x256xf32>
    %118 = tpu.matmul %117, %1, %cst_34 {dimension_numbers = #tpu.dot_dimension_numbers<[1], [0], [0], [1], [0, 0, 1, 1], [], []>} : vector<8x64xbf16>, vector<64x256xbf16>, vector<8x256xf32> -> vector<8x256xf32>
    %119 = arith.truncf %94 : vector<8x64xf32> to vector<8x64xbf16>
    %cst_35 = arith.constant dense<0.000000e+00> : vector<8x256xf32>
    %120 = tpu.matmul %119, %2, %cst_35 {dimension_numbers = #tpu.dot_dimension_numbers<[1], [0], [0], [1], [0, 0, 1, 1], [], []>} : vector<8x64xbf16>, vector<64x256xbf16>, vector<8x256xf32> -> vector<8x256xf32>
    %121 = arith.addf %118, %120 : vector<8x256xf32>
    %122 = vector.extract_strided_slice %121 {offsets = [0, 0], sizes = [8, 192], strides = [1, 1]} : vector<8x256xf32> to vector<8x192xf32>
    %123 = arith.negf %122 : vector<8x192xf32>
    %124 = math.exp %123 : vector<8x192xf32>
    %cst_36 = arith.constant 1.000000e+00 : f32
    %125 = vector.broadcast %cst_36 : f32 to vector<8x192xf32>
    %126 = arith.addf %125, %124 : vector<8x192xf32>
    %127 = arith.divf %125, %126 : vector<8x192xf32>
    %128 = vector.extract_strided_slice %121 {offsets = [0, 192], sizes = [8, 64], strides = [1, 1]} : vector<8x256xf32> to vector<8x64xf32>
    %129 = math.tanh %128 : vector<8x64xf32>
    %130 = vector.extract_strided_slice %127 {offsets = [0, 0], sizes = [8, 64], strides = [1, 1]} : vector<8x192xf32> to vector<8x64xf32>
    %131 = vector.extract_strided_slice %127 {offsets = [0, 64], sizes = [8, 64], strides = [1, 1]} : vector<8x192xf32> to vector<8x64xf32>
    %132 = vector.extract_strided_slice %127 {offsets = [0, 128], sizes = [8, 64], strides = [1, 1]} : vector<8x192xf32> to vector<8x64xf32>
    %133 = arith.mulf %131, %92 : vector<8x64xf32>
    %134 = arith.mulf %130, %129 : vector<8x64xf32>
    %135 = arith.addf %133, %134 : vector<8x64xf32>
    %136 = math.tanh %135 : vector<8x64xf32>
    %137 = arith.mulf %132, %136 : vector<8x64xf32>
    %138 = arith.truncf %137 : vector<8x64xf32> to vector<8x64xbf16>
    %c0_37 = arith.constant 0 : index
    %c128 = arith.constant 128 : index
    %139 = vector.load %arg9[%c0_37, %c128] : memref<8x512xbf16, #tpu.memory_space<vmem>>, vector<8x64xbf16>
    tpu.vector_store %arg9[%c0_37, %c128], %138 {strides = array<i32>} : memref<8x512xbf16, #tpu.memory_space<vmem>>, vector<8x64xbf16>,
    %c24 = arith.constant 24 : index
    %c0_38 = arith.constant 0 : index
    %140 = vector.load %arg8[%c24, %c0_38] : memref<64x256xf32, #tpu.memory_space<vmem>>, vector<8x256xf32>
    %141 = arith.truncf %116 : vector<8x64xf32> to vector<8x64xbf16>
    %cst_39 = arith.constant dense<0.000000e+00> : vector<8x256xf32>
    %142 = tpu.matmul %141, %0, %cst_39 {dimension_numbers = #tpu.dot_dimension_numbers<[1], [0], [0], [1], [0, 0, 1, 1], [], []>} : vector<8x64xbf16>, vector<64x256xbf16>, vector<8x256xf32> -> vector<8x256xf32>
    %143 = arith.addf %140, %142 : vector<8x256xf32>
    %144 = vector.extract_strided_slice %143 {offsets = [0, 0], sizes = [8, 192], strides = [1, 1]} : vector<8x256xf32> to vector<8x192xf32>
    %145 = arith.negf %144 : vector<8x192xf32>
    %146 = math.exp %145 : vector<8x192xf32>
    %cst_40 = arith.constant 1.000000e+00 : f32
    %147 = vector.broadcast %cst_40 : f32 to vector<8x192xf32>
    %148 = arith.addf %147, %146 : vector<8x192xf32>
    %149 = arith.divf %147, %148 : vector<8x192xf32>
    %150 = vector.extract_strided_slice %143 {offsets = [0, 192], sizes = [8, 64], strides = [1, 1]} : vector<8x256xf32> to vector<8x64xf32>
    %151 = math.tanh %150 : vector<8x64xf32>
    %152 = vector.extract_strided_slice %149 {offsets = [0, 0], sizes = [8, 64], strides = [1, 1]} : vector<8x192xf32> to vector<8x64xf32>
    %153 = vector.extract_strided_slice %149 {offsets = [0, 64], sizes = [8, 64], strides = [1, 1]} : vector<8x192xf32> to vector<8x64xf32>
    %154 = vector.extract_strided_slice %149 {offsets = [0, 128], sizes = [8, 64], strides = [1, 1]} : vector<8x192xf32> to vector<8x64xf32>
    %155 = arith.mulf %153, %114 : vector<8x64xf32>
    %156 = arith.mulf %152, %151 : vector<8x64xf32>
    %157 = arith.addf %155, %156 : vector<8x64xf32>
    %158 = math.tanh %157 : vector<8x64xf32>
    %159 = arith.mulf %154, %158 : vector<8x64xf32>
    %160 = arith.truncf %159 : vector<8x64xf32> to vector<8x64xbf16>
    %cst_41 = arith.constant dense<0.000000e+00> : vector<8x256xf32>
    %161 = tpu.matmul %160, %1, %cst_41 {dimension_numbers = #tpu.dot_dimension_numbers<[1], [0], [0], [1], [0, 0, 1, 1], [], []>} : vector<8x64xbf16>, vector<64x256xbf16>, vector<8x256xf32> -> vector<8x256xf32>
    %162 = arith.truncf %137 : vector<8x64xf32> to vector<8x64xbf16>
    %cst_42 = arith.constant dense<0.000000e+00> : vector<8x256xf32>
    %163 = tpu.matmul %162, %2, %cst_42 {dimension_numbers = #tpu.dot_dimension_numbers<[1], [0], [0], [1], [0, 0, 1, 1], [], []>} : vector<8x64xbf16>, vector<64x256xbf16>, vector<8x256xf32> -> vector<8x256xf32>
    %164 = arith.addf %161, %163 : vector<8x256xf32>
    %165 = vector.extract_strided_slice %164 {offsets = [0, 0], sizes = [8, 192], strides = [1, 1]} : vector<8x256xf32> to vector<8x192xf32>
    %166 = arith.negf %165 : vector<8x192xf32>
    %167 = math.exp %166 : vector<8x192xf32>
    %cst_43 = arith.constant 1.000000e+00 : f32
    %168 = vector.broadcast %cst_43 : f32 to vector<8x192xf32>
    %169 = arith.addf %168, %167 : vector<8x192xf32>
    %170 = arith.divf %168, %169 : vector<8x192xf32>
    %171 = vector.extract_strided_slice %164 {offsets = [0, 192], sizes = [8, 64], strides = [1, 1]} : vector<8x256xf32> to vector<8x64xf32>
    %172 = math.tanh %171 : vector<8x64xf32>
    %173 = vector.extract_strided_slice %170 {offsets = [0, 0], sizes = [8, 64], strides = [1, 1]} : vector<8x192xf32> to vector<8x64xf32>
    %174 = vector.extract_strided_slice %170 {offsets = [0, 64], sizes = [8, 64], strides = [1, 1]} : vector<8x192xf32> to vector<8x64xf32>
    %175 = vector.extract_strided_slice %170 {offsets = [0, 128], sizes = [8, 64], strides = [1, 1]} : vector<8x192xf32> to vector<8x64xf32>
    %176 = arith.mulf %174, %135 : vector<8x64xf32>
    %177 = arith.mulf %173, %172 : vector<8x64xf32>
    %178 = arith.addf %176, %177 : vector<8x64xf32>
    %179 = math.tanh %178 : vector<8x64xf32>
    %180 = arith.mulf %175, %179 : vector<8x64xf32>
    %181 = arith.truncf %180 : vector<8x64xf32> to vector<8x64xbf16>
    %c0_44 = arith.constant 0 : index
    %c192 = arith.constant 192 : index
    %182 = vector.load %arg9[%c0_44, %c192] : memref<8x512xbf16, #tpu.memory_space<vmem>>, vector<8x64xbf16>
    tpu.vector_store %arg9[%c0_44, %c192], %181 {strides = array<i32>} : memref<8x512xbf16, #tpu.memory_space<vmem>>, vector<8x64xbf16>,
    %c32 = arith.constant 32 : index
    %c0_45 = arith.constant 0 : index
    %183 = vector.load %arg8[%c32, %c0_45] : memref<64x256xf32, #tpu.memory_space<vmem>>, vector<8x256xf32>
    %184 = arith.truncf %159 : vector<8x64xf32> to vector<8x64xbf16>
    %cst_46 = arith.constant dense<0.000000e+00> : vector<8x256xf32>
    %185 = tpu.matmul %184, %0, %cst_46 {dimension_numbers = #tpu.dot_dimension_numbers<[1], [0], [0], [1], [0, 0, 1, 1], [], []>} : vector<8x64xbf16>, vector<64x256xbf16>, vector<8x256xf32> -> vector<8x256xf32>
    %186 = arith.addf %183, %185 : vector<8x256xf32>
    %187 = vector.extract_strided_slice %186 {offsets = [0, 0], sizes = [8, 192], strides = [1, 1]} : vector<8x256xf32> to vector<8x192xf32>
    %188 = arith.negf %187 : vector<8x192xf32>
    %189 = math.exp %188 : vector<8x192xf32>
    %cst_47 = arith.constant 1.000000e+00 : f32
    %190 = vector.broadcast %cst_47 : f32 to vector<8x192xf32>
    %191 = arith.addf %190, %189 : vector<8x192xf32>
    %192 = arith.divf %190, %191 : vector<8x192xf32>
    %193 = vector.extract_strided_slice %186 {offsets = [0, 192], sizes = [8, 64], strides = [1, 1]} : vector<8x256xf32> to vector<8x64xf32>
    %194 = math.tanh %193 : vector<8x64xf32>
    %195 = vector.extract_strided_slice %192 {offsets = [0, 0], sizes = [8, 64], strides = [1, 1]} : vector<8x192xf32> to vector<8x64xf32>
    %196 = vector.extract_strided_slice %192 {offsets = [0, 64], sizes = [8, 64], strides = [1, 1]} : vector<8x192xf32> to vector<8x64xf32>
    %197 = vector.extract_strided_slice %192 {offsets = [0, 128], sizes = [8, 64], strides = [1, 1]} : vector<8x192xf32> to vector<8x64xf32>
    %198 = arith.mulf %196, %157 : vector<8x64xf32>
    %199 = arith.mulf %195, %194 : vector<8x64xf32>
    %200 = arith.addf %198, %199 : vector<8x64xf32>
    %201 = math.tanh %200 : vector<8x64xf32>
    %202 = arith.mulf %197, %201 : vector<8x64xf32>
    %203 = arith.truncf %202 : vector<8x64xf32> to vector<8x64xbf16>
    %cst_48 = arith.constant dense<0.000000e+00> : vector<8x256xf32>
    %204 = tpu.matmul %203, %1, %cst_48 {dimension_numbers = #tpu.dot_dimension_numbers<[1], [0], [0], [1], [0, 0, 1, 1], [], []>} : vector<8x64xbf16>, vector<64x256xbf16>, vector<8x256xf32> -> vector<8x256xf32>
    %205 = arith.truncf %180 : vector<8x64xf32> to vector<8x64xbf16>
    %cst_49 = arith.constant dense<0.000000e+00> : vector<8x256xf32>
    %206 = tpu.matmul %205, %2, %cst_49 {dimension_numbers = #tpu.dot_dimension_numbers<[1], [0], [0], [1], [0, 0, 1, 1], [], []>} : vector<8x64xbf16>, vector<64x256xbf16>, vector<8x256xf32> -> vector<8x256xf32>
    %207 = arith.addf %204, %206 : vector<8x256xf32>
    %208 = vector.extract_strided_slice %207 {offsets = [0, 0], sizes = [8, 192], strides = [1, 1]} : vector<8x256xf32> to vector<8x192xf32>
    %209 = arith.negf %208 : vector<8x192xf32>
    %210 = math.exp %209 : vector<8x192xf32>
    %cst_50 = arith.constant 1.000000e+00 : f32
    %211 = vector.broadcast %cst_50 : f32 to vector<8x192xf32>
    %212 = arith.addf %211, %210 : vector<8x192xf32>
    %213 = arith.divf %211, %212 : vector<8x192xf32>
    %214 = vector.extract_strided_slice %207 {offsets = [0, 192], sizes = [8, 64], strides = [1, 1]} : vector<8x256xf32> to vector<8x64xf32>
    %215 = math.tanh %214 : vector<8x64xf32>
    %216 = vector.extract_strided_slice %213 {offsets = [0, 0], sizes = [8, 64], strides = [1, 1]} : vector<8x192xf32> to vector<8x64xf32>
    %217 = vector.extract_strided_slice %213 {offsets = [0, 64], sizes = [8, 64], strides = [1, 1]} : vector<8x192xf32> to vector<8x64xf32>
    %218 = vector.extract_strided_slice %213 {offsets = [0, 128], sizes = [8, 64], strides = [1, 1]} : vector<8x192xf32> to vector<8x64xf32>
    %219 = arith.mulf %217, %178 : vector<8x64xf32>
    %220 = arith.mulf %216, %215 : vector<8x64xf32>
    %221 = arith.addf %219, %220 : vector<8x64xf32>
    %222 = math.tanh %221 : vector<8x64xf32>
    %223 = arith.mulf %218, %222 : vector<8x64xf32>
    %224 = arith.truncf %223 : vector<8x64xf32> to vector<8x64xbf16>
    %c0_51 = arith.constant 0 : index
    %c256 = arith.constant 256 : index
    %225 = vector.load %arg9[%c0_51, %c256] : memref<8x512xbf16, #tpu.memory_space<vmem>>, vector<8x64xbf16>
    tpu.vector_store %arg9[%c0_51, %c256], %224 {strides = array<i32>} : memref<8x512xbf16, #tpu.memory_space<vmem>>, vector<8x64xbf16>,
    %c40 = arith.constant 40 : index
    %c0_52 = arith.constant 0 : index
    %226 = vector.load %arg8[%c40, %c0_52] : memref<64x256xf32, #tpu.memory_space<vmem>>, vector<8x256xf32>
    %227 = arith.truncf %202 : vector<8x64xf32> to vector<8x64xbf16>
    %cst_53 = arith.constant dense<0.000000e+00> : vector<8x256xf32>
    %228 = tpu.matmul %227, %0, %cst_53 {dimension_numbers = #tpu.dot_dimension_numbers<[1], [0], [0], [1], [0, 0, 1, 1], [], []>} : vector<8x64xbf16>, vector<64x256xbf16>, vector<8x256xf32> -> vector<8x256xf32>
    %229 = arith.addf %226, %228 : vector<8x256xf32>
    %230 = vector.extract_strided_slice %229 {offsets = [0, 0], sizes = [8, 192], strides = [1, 1]} : vector<8x256xf32> to vector<8x192xf32>
    %231 = arith.negf %230 : vector<8x192xf32>
    %232 = math.exp %231 : vector<8x192xf32>
    %cst_54 = arith.constant 1.000000e+00 : f32
    %233 = vector.broadcast %cst_54 : f32 to vector<8x192xf32>
    %234 = arith.addf %233, %232 : vector<8x192xf32>
    %235 = arith.divf %233, %234 : vector<8x192xf32>
    %236 = vector.extract_strided_slice %229 {offsets = [0, 192], sizes = [8, 64], strides = [1, 1]} : vector<8x256xf32> to vector<8x64xf32>
    %237 = math.tanh %236 : vector<8x64xf32>
    %238 = vector.extract_strided_slice %235 {offsets = [0, 0], sizes = [8, 64], strides = [1, 1]} : vector<8x192xf32> to vector<8x64xf32>
    %239 = vector.extract_strided_slice %235 {offsets = [0, 64], sizes = [8, 64], strides = [1, 1]} : vector<8x192xf32> to vector<8x64xf32>
    %240 = vector.extract_strided_slice %235 {offsets = [0, 128], sizes = [8, 64], strides = [1, 1]} : vector<8x192xf32> to vector<8x64xf32>
    %241 = arith.mulf %239, %200 : vector<8x64xf32>
    %242 = arith.mulf %238, %237 : vector<8x64xf32>
    %243 = arith.addf %241, %242 : vector<8x64xf32>
    %244 = math.tanh %243 : vector<8x64xf32>
    %245 = arith.mulf %240, %244 : vector<8x64xf32>
    %246 = arith.truncf %245 : vector<8x64xf32> to vector<8x64xbf16>
    %cst_55 = arith.constant dense<0.000000e+00> : vector<8x256xf32>
    %247 = tpu.matmul %246, %1, %cst_55 {dimension_numbers = #tpu.dot_dimension_numbers<[1], [0], [0], [1], [0, 0, 1, 1], [], []>} : vector<8x64xbf16>, vector<64x256xbf16>, vector<8x256xf32> -> vector<8x256xf32>
    %248 = arith.truncf %223 : vector<8x64xf32> to vector<8x64xbf16>
    %cst_56 = arith.constant dense<0.000000e+00> : vector<8x256xf32>
    %249 = tpu.matmul %248, %2, %cst_56 {dimension_numbers = #tpu.dot_dimension_numbers<[1], [0], [0], [1], [0, 0, 1, 1], [], []>} : vector<8x64xbf16>, vector<64x256xbf16>, vector<8x256xf32> -> vector<8x256xf32>
    %250 = arith.addf %247, %249 : vector<8x256xf32>
    %251 = vector.extract_strided_slice %250 {offsets = [0, 0], sizes = [8, 192], strides = [1, 1]} : vector<8x256xf32> to vector<8x192xf32>
    %252 = arith.negf %251 : vector<8x192xf32>
    %253 = math.exp %252 : vector<8x192xf32>
    %cst_57 = arith.constant 1.000000e+00 : f32
    %254 = vector.broadcast %cst_57 : f32 to vector<8x192xf32>
    %255 = arith.addf %254, %253 : vector<8x192xf32>
    %256 = arith.divf %254, %255 : vector<8x192xf32>
    %257 = vector.extract_strided_slice %250 {offsets = [0, 192], sizes = [8, 64], strides = [1, 1]} : vector<8x256xf32> to vector<8x64xf32>
    %258 = math.tanh %257 : vector<8x64xf32>
    %259 = vector.extract_strided_slice %256 {offsets = [0, 0], sizes = [8, 64], strides = [1, 1]} : vector<8x192xf32> to vector<8x64xf32>
    %260 = vector.extract_strided_slice %256 {offsets = [0, 64], sizes = [8, 64], strides = [1, 1]} : vector<8x192xf32> to vector<8x64xf32>
    %261 = vector.extract_strided_slice %256 {offsets = [0, 128], sizes = [8, 64], strides = [1, 1]} : vector<8x192xf32> to vector<8x64xf32>
    %262 = arith.mulf %260, %221 : vector<8x64xf32>
    %263 = arith.mulf %259, %258 : vector<8x64xf32>
    %264 = arith.addf %262, %263 : vector<8x64xf32>
    %265 = math.tanh %264 : vector<8x64xf32>
    %266 = arith.mulf %261, %265 : vector<8x64xf32>
    %267 = arith.truncf %266 : vector<8x64xf32> to vector<8x64xbf16>
    %c0_58 = arith.constant 0 : index
    %c320 = arith.constant 320 : index
    %268 = vector.load %arg9[%c0_58, %c320] : memref<8x512xbf16, #tpu.memory_space<vmem>>, vector<8x64xbf16>
    tpu.vector_store %arg9[%c0_58, %c320], %267 {strides = array<i32>} : memref<8x512xbf16, #tpu.memory_space<vmem>>, vector<8x64xbf16>,
    %c48 = arith.constant 48 : index
    %c0_59 = arith.constant 0 : index
    %269 = vector.load %arg8[%c48, %c0_59] : memref<64x256xf32, #tpu.memory_space<vmem>>, vector<8x256xf32>
    %270 = arith.truncf %245 : vector<8x64xf32> to vector<8x64xbf16>
    %cst_60 = arith.constant dense<0.000000e+00> : vector<8x256xf32>
    %271 = tpu.matmul %270, %0, %cst_60 {dimension_numbers = #tpu.dot_dimension_numbers<[1], [0], [0], [1], [0, 0, 1, 1], [], []>} : vector<8x64xbf16>, vector<64x256xbf16>, vector<8x256xf32> -> vector<8x256xf32>
    %272 = arith.addf %269, %271 : vector<8x256xf32>
    %273 = vector.extract_strided_slice %272 {offsets = [0, 0], sizes = [8, 192], strides = [1, 1]} : vector<8x256xf32> to vector<8x192xf32>
    %274 = arith.negf %273 : vector<8x192xf32>
    %275 = math.exp %274 : vector<8x192xf32>
    %cst_61 = arith.constant 1.000000e+00 : f32
    %276 = vector.broadcast %cst_61 : f32 to vector<8x192xf32>
    %277 = arith.addf %276, %275 : vector<8x192xf32>
    %278 = arith.divf %276, %277 : vector<8x192xf32>
    %279 = vector.extract_strided_slice %272 {offsets = [0, 192], sizes = [8, 64], strides = [1, 1]} : vector<8x256xf32> to vector<8x64xf32>
    %280 = math.tanh %279 : vector<8x64xf32>
    %281 = vector.extract_strided_slice %278 {offsets = [0, 0], sizes = [8, 64], strides = [1, 1]} : vector<8x192xf32> to vector<8x64xf32>
    %282 = vector.extract_strided_slice %278 {offsets = [0, 64], sizes = [8, 64], strides = [1, 1]} : vector<8x192xf32> to vector<8x64xf32>
    %283 = vector.extract_strided_slice %278 {offsets = [0, 128], sizes = [8, 64], strides = [1, 1]} : vector<8x192xf32> to vector<8x64xf32>
    %284 = arith.mulf %282, %243 : vector<8x64xf32>
    %285 = arith.mulf %281, %280 : vector<8x64xf32>
    %286 = arith.addf %284, %285 : vector<8x64xf32>
    %287 = math.tanh %286 : vector<8x64xf32>
    %288 = arith.mulf %283, %287 : vector<8x64xf32>
    %289 = arith.truncf %288 : vector<8x64xf32> to vector<8x64xbf16>
    %cst_62 = arith.constant dense<0.000000e+00> : vector<8x256xf32>
    %290 = tpu.matmul %289, %1, %cst_62 {dimension_numbers = #tpu.dot_dimension_numbers<[1], [0], [0], [1], [0, 0, 1, 1], [], []>} : vector<8x64xbf16>, vector<64x256xbf16>, vector<8x256xf32> -> vector<8x256xf32>
    %291 = arith.truncf %266 : vector<8x64xf32> to vector<8x64xbf16>
    %cst_63 = arith.constant dense<0.000000e+00> : vector<8x256xf32>
    %292 = tpu.matmul %291, %2, %cst_63 {dimension_numbers = #tpu.dot_dimension_numbers<[1], [0], [0], [1], [0, 0, 1, 1], [], []>} : vector<8x64xbf16>, vector<64x256xbf16>, vector<8x256xf32> -> vector<8x256xf32>
    %293 = arith.addf %290, %292 : vector<8x256xf32>
    %294 = vector.extract_strided_slice %293 {offsets = [0, 0], sizes = [8, 192], strides = [1, 1]} : vector<8x256xf32> to vector<8x192xf32>
    %295 = arith.negf %294 : vector<8x192xf32>
    %296 = math.exp %295 : vector<8x192xf32>
    %cst_64 = arith.constant 1.000000e+00 : f32
    %297 = vector.broadcast %cst_64 : f32 to vector<8x192xf32>
    %298 = arith.addf %297, %296 : vector<8x192xf32>
    %299 = arith.divf %297, %298 : vector<8x192xf32>
    %300 = vector.extract_strided_slice %293 {offsets = [0, 192], sizes = [8, 64], strides = [1, 1]} : vector<8x256xf32> to vector<8x64xf32>
    %301 = math.tanh %300 : vector<8x64xf32>
    %302 = vector.extract_strided_slice %299 {offsets = [0, 0], sizes = [8, 64], strides = [1, 1]} : vector<8x192xf32> to vector<8x64xf32>
    %303 = vector.extract_strided_slice %299 {offsets = [0, 64], sizes = [8, 64], strides = [1, 1]} : vector<8x192xf32> to vector<8x64xf32>
    %304 = vector.extract_strided_slice %299 {offsets = [0, 128], sizes = [8, 64], strides = [1, 1]} : vector<8x192xf32> to vector<8x64xf32>
    %305 = arith.mulf %303, %264 : vector<8x64xf32>
    %306 = arith.mulf %302, %301 : vector<8x64xf32>
    %307 = arith.addf %305, %306 : vector<8x64xf32>
    %308 = math.tanh %307 : vector<8x64xf32>
    %309 = arith.mulf %304, %308 : vector<8x64xf32>
    %310 = arith.truncf %309 : vector<8x64xf32> to vector<8x64xbf16>
    %c0_65 = arith.constant 0 : index
    %c384 = arith.constant 384 : index
    %311 = vector.load %arg9[%c0_65, %c384] : memref<8x512xbf16, #tpu.memory_space<vmem>>, vector<8x64xbf16>
    tpu.vector_store %arg9[%c0_65, %c384], %310 {strides = array<i32>} : memref<8x512xbf16, #tpu.memory_space<vmem>>, vector<8x64xbf16>,
    %c56 = arith.constant 56 : index
    %c0_66 = arith.constant 0 : index
    %312 = vector.load %arg8[%c56, %c0_66] : memref<64x256xf32, #tpu.memory_space<vmem>>, vector<8x256xf32>
    %313 = arith.truncf %288 : vector<8x64xf32> to vector<8x64xbf16>
    %cst_67 = arith.constant dense<0.000000e+00> : vector<8x256xf32>
    %314 = tpu.matmul %313, %0, %cst_67 {dimension_numbers = #tpu.dot_dimension_numbers<[1], [0], [0], [1], [0, 0, 1, 1], [], []>} : vector<8x64xbf16>, vector<64x256xbf16>, vector<8x256xf32> -> vector<8x256xf32>
    %315 = arith.addf %312, %314 : vector<8x256xf32>
    %316 = vector.extract_strided_slice %315 {offsets = [0, 0], sizes = [8, 192], strides = [1, 1]} : vector<8x256xf32> to vector<8x192xf32>
    %317 = arith.negf %316 : vector<8x192xf32>
    %318 = math.exp %317 : vector<8x192xf32>
    %cst_68 = arith.constant 1.000000e+00 : f32
    %319 = vector.broadcast %cst_68 : f32 to vector<8x192xf32>
    %320 = arith.addf %319, %318 : vector<8x192xf32>
    %321 = arith.divf %319, %320 : vector<8x192xf32>
    %322 = vector.extract_strided_slice %315 {offsets = [0, 192], sizes = [8, 64], strides = [1, 1]} : vector<8x256xf32> to vector<8x64xf32>
    %323 = math.tanh %322 : vector<8x64xf32>
    %324 = vector.extract_strided_slice %321 {offsets = [0, 0], sizes = [8, 64], strides = [1, 1]} : vector<8x192xf32> to vector<8x64xf32>
    %325 = vector.extract_strided_slice %321 {offsets = [0, 64], sizes = [8, 64], strides = [1, 1]} : vector<8x192xf32> to vector<8x64xf32>
    %326 = vector.extract_strided_slice %321 {offsets = [0, 128], sizes = [8, 64], strides = [1, 1]} : vector<8x192xf32> to vector<8x64xf32>
    %327 = arith.mulf %325, %286 : vector<8x64xf32>
    %328 = arith.mulf %324, %323 : vector<8x64xf32>
    %329 = arith.addf %327, %328 : vector<8x64xf32>
    %330 = math.tanh %329 : vector<8x64xf32>
    %331 = arith.mulf %326, %330 : vector<8x64xf32>
    %332 = arith.truncf %331 : vector<8x64xf32> to vector<8x64xbf16>
    %cst_69 = arith.constant dense<0.000000e+00> : vector<8x256xf32>
    %333 = tpu.matmul %332, %1, %cst_69 {dimension_numbers = #tpu.dot_dimension_numbers<[1], [0], [0], [1], [0, 0, 1, 1], [], []>} : vector<8x64xbf16>, vector<64x256xbf16>, vector<8x256xf32> -> vector<8x256xf32>
    %334 = arith.truncf %309 : vector<8x64xf32> to vector<8x64xbf16>
    %cst_70 = arith.constant dense<0.000000e+00> : vector<8x256xf32>
    %335 = tpu.matmul %334, %2, %cst_70 {dimension_numbers = #tpu.dot_dimension_numbers<[1], [0], [0], [1], [0, 0, 1, 1], [], []>} : vector<8x64xbf16>, vector<64x256xbf16>, vector<8x256xf32> -> vector<8x256xf32>
    %336 = arith.addf %333, %335 : vector<8x256xf32>
    %337 = vector.extract_strided_slice %336 {offsets = [0, 0], sizes = [8, 192], strides = [1, 1]} : vector<8x256xf32> to vector<8x192xf32>
    %338 = arith.negf %337 : vector<8x192xf32>
    %339 = math.exp %338 : vector<8x192xf32>
    %cst_71 = arith.constant 1.000000e+00 : f32
    %340 = vector.broadcast %cst_71 : f32 to vector<8x192xf32>
    %341 = arith.addf %340, %339 : vector<8x192xf32>
    %342 = arith.divf %340, %341 : vector<8x192xf32>
    %343 = vector.extract_strided_slice %336 {offsets = [0, 192], sizes = [8, 64], strides = [1, 1]} : vector<8x256xf32> to vector<8x64xf32>
    %344 = math.tanh %343 : vector<8x64xf32>
    %345 = vector.extract_strided_slice %342 {offsets = [0, 0], sizes = [8, 64], strides = [1, 1]} : vector<8x192xf32> to vector<8x64xf32>
    %346 = vector.extract_strided_slice %342 {offsets = [0, 64], sizes = [8, 64], strides = [1, 1]} : vector<8x192xf32> to vector<8x64xf32>
    %347 = vector.extract_strided_slice %342 {offsets = [0, 128], sizes = [8, 64], strides = [1, 1]} : vector<8x192xf32> to vector<8x64xf32>
    %348 = arith.mulf %346, %307 : vector<8x64xf32>
    %349 = arith.mulf %345, %344 : vector<8x64xf32>
    %350 = arith.addf %348, %349 : vector<8x64xf32>
    %351 = math.tanh %350 : vector<8x64xf32>
    %352 = arith.mulf %347, %351 : vector<8x64xf32>
    %353 = arith.truncf %352 : vector<8x64xf32> to vector<8x64xbf16>
    %c0_72 = arith.constant 0 : index
    %c448 = arith.constant 448 : index
    %354 = vector.load %arg9[%c0_72, %c448] : memref<8x512xbf16, #tpu.memory_space<vmem>>, vector<8x64xbf16>
    tpu.vector_store %arg9[%c0_72, %c448], %353 {strides = array<i32>} : memref<8x512xbf16, #tpu.memory_space<vmem>>, vector<8x64xbf16>,
    %c0_73 = arith.constant 0 : index
    %c0_74 = arith.constant 0 : index
    %355 = vector.load %arg9[%c0_73, %c0_74] : memref<8x512xbf16, #tpu.memory_space<vmem>>, vector<8x512xbf16>
    %c0_75 = arith.constant 0 : index
    %c0_76 = arith.constant 0 : index
    %356 = vector.load %arg5[%c0_75, %c0_76] : memref<512x64xbf16, #tpu.memory_space<vmem>>, vector<512x64xbf16>
    %cst_77 = arith.constant dense<0.000000e+00> : vector<8x64xf32>
    %357 = tpu.matmul %355, %356, %cst_77 {dimension_numbers = #tpu.dot_dimension_numbers<[1], [0], [0], [1], [0, 0, 1, 1], [], []>} : vector<8x512xbf16>, vector<512x64xbf16>, vector<8x64xf32> -> vector<8x64xf32>
    %cst_78 = arith.constant 0.000000e+00 : f32
    %358 = vector.broadcast %cst_78 : f32 to vector<8x64xf32>
    %359 = arith.maximumf %357, %358 : vector<8x64xf32>
    %360 = arith.truncf %359 : vector<8x64xf32> to vector<8x64xbf16>
    %c0_79 = arith.constant 0 : index
    %c0_80 = arith.constant 0 : index
    %361 = vector.load %arg6[%c0_79, %c0_80] : memref<64x1xbf16, #tpu.memory_space<vmem>>, vector<64x1xbf16>
    %cst_81 = arith.constant dense<0.000000e+00> : vector<8x1xf32>
    %362 = tpu.matmul %360, %361, %cst_81 {dimension_numbers = #tpu.dot_dimension_numbers<[1], [0], [0], [1], [0, 0, 1, 1], [], []>} : vector<8x64xbf16>, vector<64x1xbf16>, vector<8x1xf32> -> vector<8x1xf32>
    %363 = vector.extract_strided_slice %362 {offsets = [0, 0], sizes = [2, 1], strides = [1, 1]} : vector<8x1xf32> to vector<2x1xf32>
    %c0_82 = arith.constant 0 : index
    %c0_83 = arith.constant 0 : index
    %364 = vector.load %arg7[%c0_82, %c0_83] : memref<2x1xf32, #tpu.memory_space<vmem>>, vector<2x1xf32>
    tpu.vector_store %arg7[%c0_82, %c0_83], %363 {strides = array<i32>} : memref<2x1xf32, #tpu.memory_space<vmem>>, vector<2x1xf32>,
    return
  }
}

</mosaic_0001>

<bundles_post_ra>
// kernel: encoder_decoder_lstm.1
= control target key start
LH: loop header
LB: loop body
LE: loop exit
PB: predicated region body
PF: predicated region fallthrough
CT: control target
= control target key end

     0   :  { %vm97_vm0 = vcmask 1041408   ;;  %vm84_vm1 = vcmask 31744   ;;  %v2918_v30 = vmov 0   ;;  %vm218_vm10 = vcmask 523264   ;;  %s3752_s2 = inlined_call_operand.vmem [shape: bf16[64,256], index: 2, kind: input, shape index: {}]   ;;  %s3753_s1 = inlined_call_operand.vmem [shape: bf16[4,256], index: 1, kind: input, shape index: {}]   ;;  %s3754_s0 = inlined_call_operand.vmem [shape: bf16[64,4], index: 0, kind: input, shape index: {}]   ;;  %s3755_s4 = inlined_call_operand.vmem [shape: bf16[64,256], index: 4, kind: input, shape index: {}]   ;;  %s3756_s3 = inlined_call_operand.vmem [shape: bf16[64,256], index: 3, kind: input, shape index: {}]   ;;  %s3757_s5 = inlined_call_operand.vmem [shape: bf16[512,64], index: 5, kind: input, shape index: {}]   ;;  %s3758_s6 = inlined_call_operand.vmem [shape: bf16[64,1], index: 6, kind: input, shape index: {}]   ;;  %s3759_s7 = inlined_call_operand.vmem [shape: f32[2,1], index: 7, kind: output, shape index: {}]  }
   0x1   :  { %v2666_v0 = vld [vmem:[%s3752_s2 + $0x34] sm:$0xf]  ;;  %v2371_v1 = vld [vmem:[%s3752_s2 + $0x38] sm:$0xf0]  ;;  %v2664_v2 = vld [vmem:[%s3752_s2 + $0x24] sm:$0xf] }
   0x2   :  { %v2969_v3 = vor.u32 %v2666_v0, %v2371_v1  ;;  %v2363_v4 = vld [vmem:[%s3752_s2 + $0x28] sm:$0xf0]  ;;  %v2662_v5 = vld [vmem:[%s3752_s2 + $0x14] sm:$0xf]  ;;  %v59_v6 = vld [vmem:[%s3753_s1] sm:$0xf] }
   0x3   :  { %v2981_v7 = vor.u32 %v2664_v2, %v2363_v4  ;;  %v2355_v8 = vld [vmem:[%s3752_s2 + $0x18] sm:$0xf0]  ;;  %81 = vst [vmem:[#allocation1] ss:$4 sm:$0xff] %v59_v6  ;;  %v2369_v9 = vld [vmem:[%s3752_s2 + $0x30] sm:$0xf] }
   0x4   :  { %239 = vmatpush.bf16.msra.mxu3 %v2969_v3  ;;  %v2667_v10 = vld [vmem:[%s3752_s2 + $0x34] sm:$0xf0]  ;;  %v2361_v11 = vld [vmem:[%s3752_s2 + $0x20] sm:$0xf]  ;;  %v2665_v12 = vld [vmem:[%s3752_s2 + $0x24] sm:$0xf0]  ;;  %v3001_v14 = vor.u32 %v2662_v5, %v2355_v8 }
   0x5   :  { %v2998_v13 = vor.u32 %v2667_v10, %v2369_v9  ;;  %v3004_v15 = vor.u32 %v2665_v12, %v2361_v11  ;;  %v2660_v16 = vld [vmem:[%s3752_s2 + $0x4] sm:$0xf]  ;;  %v2347_v17 = vld [vmem:[%s3752_s2 + $0x8] sm:$0xf0]  ;;  %v2353_v18 = vld [vmem:[%s3752_s2 + $0x10] sm:$0xf] }
   0x6   :  { %v2663_v19 = vld [vmem:[%s3752_s2 + $0x14] sm:$0xf0]  ;;  %v3019_v23 = vor.u32 %v2660_v16, %v2347_v17  ;;  %v2684_v24 = vld [vmem:[%s3754_s0] sm:$0xff]  ;;  %v2661_v28 = vld [vmem:[%s3752_s2 + $0x4] sm:$0xf0] }
   0x7   :  { %226 = vmatpush.bf16.msra.mxu2 %v2998_v13  ;;  %v3025_v26 = vor.u32 %v2663_v19, %v2353_v18  ;;  %v2345_v27 = vld [vmem:[%s3752_s2] sm:$0xf]  ;;  %s2919_s2 = smov 64   ;;  %v2682_v55 = vld [vmem:[%s3755_s4 + $0x34] sm:$0xf] }
   0x8   :  { %240 = vmatpush.bf16.msra.mxu3 %v2981_v7  ;;  %v3036_v29 = vor.u32 %v2661_v28, %v2345_v27  ;;  %v2405_v56 = vld [vmem:[%s3755_s4 + $0x38] sm:$0xf0]  ;;  %v2680_v57 = vld [vmem:[%s3755_s4 + $0x24] sm:$0xf]  ;;  %v2397_v59 = vld [vmem:[%s3755_s4 + $0x28] sm:$0xf0] }
   0x9   :  { %v3059_v58 = vor.u32 %v2682_v55, %v2405_v56  ;;  %v2403_v60 = vld [vmem:[%s3755_s4 + $0x30] sm:$0xf]  ;;  %v2683_v61 = vld [vmem:[%s3755_s4 + $0x34] sm:$0xf0]  ;;  %v2395_v63 = vld [vmem:[%s3755_s4 + $0x20] sm:$0xf]  ;;  %v3076_v0 = vor.u32 %v2680_v57, %v2397_v59 }
   0xa   :  { %v83_v20 = vld.sshfl [vmem:[#allocation1 + $0x8] sm:$0xff pattern:$0x73625140]  ;;  %v82_v21 = vld.sshfl [vmem:[#allocation1] sm:$0xff pattern:$0x73625140]  ;;  %v3070_v62 = vor.u32 %v2683_v61, %v2403_v60 }
   0xb   :  { %v100_v22 = vsel %vm97_vm0, %v83_v20, 0  ;;  %227 = vmatpush.bf16.msra.mxu2 %v3004_v15  ;;  %v98_v25 = vsel %vm97_vm0, %v82_v21, 0  ;;  %v2681_v1 = vld [vmem:[%s3755_s4 + $0x24] sm:$0xf0]  ;;  %v2678_v2 = vld [vmem:[%s3755_s4 + $0x14] sm:$0xf] }
   0xc   :  { %241 = vmatpush.bf16.msra.mxu3 %v3001_v14  ;;  %138 = vmatpush.bf16.msra.mxu1 %v100_v22  ;;  %v2389_v4 = vld [vmem:[%s3755_s4 + $0x18] sm:$0xf0]  ;;  %v3089_v5 = vor.u32 %v2681_v1, %v2395_v63  ;;  %v2387_v6 = vld [vmem:[%s3755_s4 + $0x10] sm:$0xf]  ;;  %v2679_v8 = vld [vmem:[%s3755_s4 + $0x14] sm:$0xf0] }
   0xd   :  { %109 = vmatpush.bf16.msra.mxu0 %v98_v25  ;;  %v3099_v9 = vor.u32 %v2678_v2, %v2389_v4  ;;  %v2676_v10 = vld [vmem:[%s3755_s4 + $0x4] sm:$0xf]  ;;  %v2381_v11 = vld [vmem:[%s3755_s4 + $0x8] sm:$0xf0]  ;;  %v3109_v12 = vor.u32 %v2679_v8, %v2387_v6  ;;  %v2379_v16 = vld [vmem:[%s3755_s4] sm:$0xf] }
   0xe   :  { %v2677_v17 = vld [vmem:[%s3755_s4 + $0x4] sm:$0xf0]  ;;  %v2674_v18 = vld [vmem:[%s3756_s3 + $0x34] sm:$0xf]  ;;  %v2437_v19 = vld [vmem:[%s3756_s3 + $0x38] sm:$0xf0]  ;;  %v3131_v22 = vor.u32 %v2676_v10, %v2381_v11 }
   0xf   :  { %2339 = vmatmul.msk.bf16.vlgmr.msra.gmra.mxu1 %vm84_vm1, %v2684_v24  ;;  %228 = vmatpush.bf16.msra.mxu2 %v3025_v26  ;;  %v2435_v20 = vld [vmem:[%s3756_s3 + $0x30] sm:$0xf]  ;;  %v2675_v21 = vld [vmem:[%s3756_s3 + $0x34] sm:$0xf0]  ;;  %v3137_v25 = vor.u32 %v2674_v18, %v2437_v19  ;;  %v2672_v28 = vld [vmem:[%s3756_s3 + $0x24] sm:$0xf] }
  0x10   :  { %242 = vmatpush.bf16.msra.mxu3 %v3019_v23  ;;  %2335 = vmatmul.msk.bf16.vlgmr.msra.gmra.mxu0 %vm84_vm1, %v2684_v24  ;;  %v3135_v24 = vor.u32 %v2677_v17, %v2379_v16  ;;  %v3140_v27 = vor.u32 %v2675_v21, %v2435_v20 }
  0x11   :  { %608 = vmatpush.bf16.msrb.mxu1 %v3059_v58  ;;  %595 = vmatpush.bf16.msrb.mxu0 %v3070_v62 }
  0x13   :  { %243 = vmatmul.bf16.vlgmr.msra.gmra.mxu3 %v2918_v30  ;;  %229 = vmatpush.bf16.msra.mxu2 %v3036_v29 }
  0x14   :  { %364 = vmatpush.bf16.msrb.mxu3 %v3059_v58 }
  0x15   :  { %609 = vmatpush.bf16.msrb.mxu1 %v3076_v0  ;;  %596 = vmatpush.bf16.msrb.mxu0 %v3089_v5 }
  0x16   :  { %230 = vmatmul.bf16.vlgmr.msra.gmra.mxu2 %v2918_v30 }
  0x17   :  { %351 = vmatpush.bf16.msrb.mxu2 %v3070_v62 }
  0x18   :  { %365 = vmatpush.bf16.msrb.mxu3 %v3076_v0 }
  0x19   :  { %610 = vmatpush.bf16.msrb.mxu1 %v3099_v9  ;;  %597 = vmatpush.bf16.msrb.mxu0 %v3109_v12 }
  0x1b   :  { %352 = vmatpush.bf16.msrb.mxu2 %v3089_v5 }
  0x1c   :  { %366 = vmatpush.bf16.msrb.mxu3 %v3099_v9 }
  0x1d   :  { %611 = vmatpush.bf16.msrb.mxu1 %v3131_v22  ;;  %598 = vmatpush.bf16.msrb.mxu0 %v3135_v24 }
  0x1f   :  { %353 = vmatpush.bf16.msrb.mxu2 %v3109_v12 }
  0x20   :  { %367 = vmatpush.bf16.msrb.mxu3 %v3131_v22 }
  0x21   :  { %715 = vmatpush.bf16.msra.mxu0 %v2998_v13  ;;  %728 = vmatpush.bf16.msra.mxu1 %v2969_v3 }
  0x23   :  { %354 = vmatpush.bf16.msrb.mxu2 %v3135_v24  ;;  %368 = vmatmul.bf16.vlgmr.msrb.gmra.mxu3 %v2918_v30 }
  0x24   :  { %433 = vmatpush.bf16.msra.mxu3 %v3137_v25 }
  0x25   :  { %716 = vmatpush.bf16.msra.mxu0 %v3004_v15  ;;  %729 = vmatpush.bf16.msra.mxu1 %v2981_v7 }
  0x26   :  { %355 = vmatmul.bf16.vlgmr.msrb.gmra.mxu2 %v2918_v30 }
  0x27   :  { %420 = vmatpush.bf16.msra.mxu2 %v3140_v27 }
  0x29   :  { %717 = vmatpush.bf16.msra.mxu0 %v3025_v26  ;;  %730 = vmatpush.bf16.msra.mxu1 %v3001_v14 }
  0x2d   :  { %718 = vmatpush.bf16.msra.mxu0 %v3036_v29  ;;  %731 = vmatpush.bf16.msra.mxu1 %v3019_v23 }
  0x8c   :  { %v140_v31 = vpop.f32.mrf.mxu1 }
  0x8d   :  { %v111_v38 = vpop.f32.mrf.mxu0 }
  0x96   :  { %v244_v32 = vpop.f32.mrf.mxu3 }
  0x97   :  { %v3042_v33 = vadd.f32 %v244_v32, %v140_v31  ;;  %v2429_v31 = vld [vmem:[%s3756_s3 + $0x28] sm:$0xf0]  ;;  %v2427_v32 = vld [vmem:[%s3756_s3 + $0x20] sm:$0xf] }
  0x99   :  { %2726 = vtanh.f32 %v3042_v33  ;;  %v231_v34 = vpop.f32.mrf.mxu2 }
  0x9a   :  { %v248_v39 = vadd.f32 %v231_v34, %v111_v38  ;;  %v2673_v34 = vld [vmem:[%s3756_s3 + $0x24] sm:$0xf0]  ;;  %v2421_v38 = vld [vmem:[%s3756_s3 + $0x18] sm:$0xf0] }
  0x9c   :  { %v2375_v40 = vmul.f32 -1.442695, %v248_v39  ;;  %v2419_v39 = vld [vmem:[%s3756_s3 + $0x10] sm:$0xf] }
  0x9e   :  { %v246_v35 = vpop.f32.mrf.mxu3  ;;  %2728 = vpow2.f32 %v2375_v40  ;;  %v2671_v40 = vld [vmem:[%s3756_s3 + $0x14] sm:$0xf0] }
  0x9f   :  { %v2727_v36 = vpop.eup %2726  ;;  %v3158_v35 = vor.u32 %v2672_v28, %v2429_v31 }
  0xa0   :  { %291 = vrot.lane.b32.xlu0 %v2727_v36, %s2919_s2  ;;  %v3161_v36 = vor.u32 %v2673_v34, %v2427_v32  ;;  %v142_v32 = vpop.f32.mrf.mxu1 }
  0xa1   :  { %v233_v37 = vpop.f32.mrf.mxu2  ;;  %434 = vmatpush.bf16.msra.mxu3 %v3158_v35 }
  0xa2   :  { %v2670_v37 = vld [vmem:[%s3756_s3 + $0x14] sm:$0xf]  ;;  %421 = vmatpush.bf16.msra.mxu2 %v3161_v36 }
  0xa4   :  { %v2729_v41 = vpop.eup %2728 }
  0xa5   :  { %v256_v42 = vadd.f32 1.0, %v2729_v41  ;;  %v3181_v41 = vor.u32 %v2670_v37, %v2421_v38 }
  0xa6   :  { %v369_v10 = vpop.f32.mrf.mxu3 }
  0xa7   :  { %2730 = vrcp.f32 %v256_v42  ;;  %vm263_vm2 = vweird.f32 %v256_v42  ;;  %v269_v47 = vand.u32 2147483648, %v256_v42  ;;  %v267_v49 = vand.u32 2147483647, %v256_v42  ;;  %435 = vmatpush.bf16.msra.mxu3 %v3181_v41 }
  0xa9   :  { %v270_v50 = vor.u32 1.1754944e-38, %v269_v47  ;;  %vm268_vm5 = vcmp.eq.f32.partialorder %v267_v49, 8.507059e+37  ;;  %v2413_v49 = vld [vmem:[%s3756_s3 + $0x8] sm:$0xf0]  ;;  %v356_v11 = vpop.f32.mrf.mxu2 }
  0xad   :  { %v2731_v43 = vpop.eup %2730 }
  0xae   :  { %v259_v44 = vmul.f32 %v2731_v43, %v256_v42  ;;  %vm264_vm3 = vweird.f32 %v2731_v43  ;;  %v371_v16 = vpop.f32.mrf.mxu3 }
  0xaf   :  { %vm265_vm4 = vmor %vm263_vm2, %vm264_vm3 }
  0xb0   :  { %v260_v45 = vsub.f32 1.0, %v259_v44 }
  0xb1   :  { %v358_v17 = vpop.f32.mrf.mxu2 }
  0xb2   :  { %v261_v46 = vmul.f32 %v2731_v43, %v260_v45 }
  0xb4   :  { %v262_v48 = vadd.f32 %v2731_v43, %v261_v46  ;;  %v2376_v46 = vmul.f32 -1.442695, %v3042_v33  ;;  %v2669_v33 = vld [vmem:[%s3756_s3 + $0x4] sm:$0xf0] }
  0xb6   :  { %v266_v51 = vsel %vm265_vm4, %v2731_v43, %v262_v48  ;;  %v3185_v43 = vor.u32 %v2671_v40, %v2419_v39  ;;  %v2668_v48 = vld [vmem:[%s3756_s3 + $0x4] sm:$0xf] }
  0xb7   :  { %v3046_v53 = vsel %vm268_vm5, %v270_v50, %v266_v51  ;;  %v2411_v50 = vld [vmem:[%s3756_s3] sm:$0xf] }
  0xb8   :  { %v289_v42 = vmul.f32 0.0, %v3046_v53  ;;  %422 = vmatpush.bf16.msra.mxu2 %v3185_v43 }
 0x112   :  { %v292_v52 = vpop.permute.xlu0 %291 }
 0x113   :  { %v294_v54 = vmul.f32 %v292_v52, %v3046_v53  ;;  %v3209_v52 = vor.u32 %v2668_v48, %v2413_v49  ;;  %v3214_v53 = vor.u32 %v2669_v33, %v2411_v50  ;;  %v113_v33 = vpop.f32.mrf.mxu0 }
 0x115   :  { %296 = vrot.lane.b32.xlu0 %v294_v54, %s2919_s2  ;;  %436 = vmatpush.bf16.msra.mxu3 %v3209_v52 }
 0x116   :  { %423 = vmatpush.bf16.msra.mxu2 %v3214_v53 }
 0x119   :  { %520 = vmatpush.bf16.msrb.mxu3 %v2969_v3 }
 0x11a   :  { %507 = vmatpush.bf16.msrb.mxu2 %v2998_v13 }
 0x11d   :  { %521 = vmatpush.bf16.msrb.mxu3 %v2981_v7 }
 0x11e   :  { %508 = vmatpush.bf16.msrb.mxu2 %v3004_v15 }
 0x121   :  { %522 = vmatpush.bf16.msrb.mxu3 %v3001_v14 }
 0x122   :  { %509 = vmatpush.bf16.msrb.mxu2 %v3025_v26 }
 0x125   :  { %523 = vmatpush.bf16.msrb.mxu3 %v3019_v23 }
 0x126   :  { %510 = vmatpush.bf16.msrb.mxu2 %v3036_v29 }
 0x187   :  { %v297_v44 = vpop.permute.xlu0 %296 }
 0x188   :  { %v3188_v45 = vadd.f32 %v297_v44, %v289_v42 }
 0x18a   :  { %2732 = vtanh.f32 %v3188_v45 }
 0x18b   :  { %2734 = vpow2.f32 %v2376_v46 }
 0x190   :  { %v2733_v30 = vpop.eup %2732 }
 0x191   :  { %302 = vrot.lane.b32.xlu1 %v2733_v30, %s2919_s2  ;;  %v2735_v47 = vpop.eup %2734 }
 0x192   :  { %v257_v51 = vadd.f32 1.0, %v2735_v47 }
 0x194   :  { %2736 = vrcp.f32 %v257_v51  ;;  %v284_v60 = vand.u32 2147483648, %v257_v51  ;;  %vm278_vm7 = vweird.f32 %v257_v51  ;;  %v282_v61 = vand.u32 2147483647, %v257_v51 }
 0x196   :  { %v285_v1 = vor.u32 1.1754944e-38, %v284_v60  ;;  %vm283_vm9 = vcmp.eq.f32.partialorder %v282_v61, 8.507059e+37 }
 0x19a   :  { %v2737_v54 = vpop.eup %2736 }
 0x19b   :  { %v274_v55 = vmul.f32 %v2737_v54, %v257_v51  ;;  %vm279_vm6 = vweird.f32 %v2737_v54 }
 0x19c   :  { %vm280_vm8 = vmor %vm278_vm7, %vm279_vm6  ;;  %vm499_vm7 = vcmask 519168  }
 0x19d   :  { %v275_v56 = vsub.f32 1.0, %v274_v55 }
 0x19f   :  { %v276_v57 = vmul.f32 %v2737_v54, %v275_v56 }
 0x1a1   :  { %v277_v59 = vadd.f32 %v2737_v54, %v276_v57 }
 0x1a3   :  { %v281_v63 = vsel %vm280_vm8, %v2737_v54, %v277_v59 }
 0x1a4   :  { %v286_v2 = vsel %vm283_vm9, %v285_v1, %v281_v63 }
 0x203   :  { %v303_v4 = vpop.permute.xlu1 %302 }
 0x204   :  { %v305_v6 = vmul.f32 %v303_v4, %v286_v2 }
 0x206   :  { %v306_v8 = vpack.c.bf16 %v305_v6, %v305_v6 }
 0x208   :  { %2441 = vmatmul.msk.bf16.vlgmr.msra.gmra.mxu2 %vm218_vm10, %v306_v8  ;;  %2442 = vmatmul.msk.bf16.vlgmr.msra.gmra.mxu3 %vm218_vm10, %v306_v8 }
 0x209   :  { %637 = vmatpush.bf16.msra.mxu3 %v3137_v25  ;;  %624 = vmatpush.bf16.msra.mxu2 %v3140_v27 }
 0x20d   :  { %638 = vmatpush.bf16.msra.mxu3 %v3158_v35  ;;  %625 = vmatpush.bf16.msra.mxu2 %v3161_v36 }
 0x211   :  { %639 = vmatpush.bf16.msra.mxu3 %v3181_v41  ;;  %626 = vmatpush.bf16.msra.mxu2 %v3185_v43 }
 0x215   :  { %640 = vmatpush.bf16.msra.mxu3 %v3209_v52  ;;  %627 = vmatpush.bf16.msra.mxu2 %v3214_v53 }
 0x218   :  { %2445 = vmatmul.msk.bf16.vlgmr.msrb.gmra.mxu2 %vm218_vm10, %v306_v8  ;;  %2446 = vmatmul.msk.bf16.vlgmr.msrb.gmra.mxu3 %vm218_vm10, %v306_v8 }
 0x219   :  { %816 = vmatpush.bf16.msrb.mxu3 %v3059_v58  ;;  %803 = vmatpush.bf16.msrb.mxu2 %v3070_v62 }
 0x21d   :  { %817 = vmatpush.bf16.msrb.mxu3 %v3076_v0  ;;  %804 = vmatpush.bf16.msrb.mxu2 %v3089_v5 }
 0x221   :  { %818 = vmatpush.bf16.msrb.mxu3 %v3099_v9  ;;  %805 = vmatpush.bf16.msrb.mxu2 %v3109_v12 }
 0x225   :  { %819 = vmatpush.bf16.msrb.mxu3 %v3131_v22  ;;  %806 = vmatpush.bf16.msrb.mxu2 %v3135_v24 }
 0x28b   :  { %v425_v18 = vpop.f32.mrf.mxu2  ;;  %v438_v19 = vpop.f32.mrf.mxu3 }
 0x28c   :  { %v3246_v20 = vadd.f32 %v438_v19, %v369_v10  ;;  %v426_v44 = vadd.f32 %v425_v18, %v356_v11 }
 0x28e   :  { %2738 = vtanh.f32 %v3246_v20  ;;  %v2443_v30 = vmul.f32 -1.442695, %v426_v44  ;;  %v2686_v44 = vld [vmem:[%s3754_s0 + $0x10] sm:$0xff] }
 0x293   :  { %v427_v21 = vpop.f32.mrf.mxu2  ;;  %v440_v28 = vpop.f32.mrf.mxu3 }
 0x294   :  { %v2739_v31 = vpop.eup %2738 }
 0x295   :  { %483 = vrot.lane.b32.xlu2 %v2739_v31, %s2919_s2 }
 0x29b   :  { %v512_v34 = vpop.f32.mrf.mxu2  ;;  %v525_v37 = vpop.f32.mrf.mxu3 }
 0x29c   :  { %v3250_v38 = vadd.f32 %v525_v37, %v142_v32  ;;  %v529_v54 = vadd.f32 %v512_v34, %v113_v33  ;;  %v2685_v37 = vld [vmem:[%s3754_s0 + $0x8] sm:$0xff] }
 0x29d   :  { %2336 = vmatmul.msk.bf16.gmra.mxu0 %vm84_vm1, %v2685_v37  ;;  %2340 = vmatmul.msk.bf16.gmra.mxu1 %vm84_vm1, %v2685_v37 }
 0x29e   :  { %2740 = vtanh.f32 %v3250_v38  ;;  %v2447_v57 = vmul.f32 -1.442695, %v529_v54 }
 0x29f   :  { %2742 = vpow2.f32 %v2443_v30 }
 0x2a3   :  { %v514_v39 = vpop.f32.mrf.mxu2  ;;  %v527_v40 = vpop.f32.mrf.mxu3 }
 0x2a4   :  { %v2741_v42 = vpop.eup %2740 }
 0x2a5   :  { %572 = vrot.lane.b32.xlu1 %v2741_v42, %s2919_s2  ;;  %v2743_v46 = vpop.eup %2742 }
 0x2a6   :  { %v448_v47 = vadd.f32 1.0, %v2743_v46 }
 0x2a8   :  { %2744 = vrcp.f32 %v448_v47  ;;  %v461_v56 = vand.u32 2147483648, %v448_v47  ;;  %vm455_vm12 = vweird.f32 %v448_v47  ;;  %v459_v59 = vand.u32 2147483647, %v448_v47 }
 0x2a9   :  { %2746 = vpow2.f32 %v2447_v57 }
 0x2aa   :  { %v462_v61 = vor.u32 1.1754944e-38, %v461_v56  ;;  %vm460_vm14 = vcmp.eq.f32.partialorder %v459_v59, 8.507059e+37 }
 0x2ad   :  { %2337 = vmatmul.msk.bf16.gmra.mxu0 %vm84_vm1, %v2686_v44  ;;  %2341 = vmatmul.msk.bf16.gmra.mxu1 %vm84_vm1, %v2686_v44 }
 0x2ae   :  { %v2745_v48 = vpop.eup %2744 }
 0x2af   :  { %v451_v49 = vmul.f32 %v2745_v48, %v448_v47  ;;  %vm456_vm11 = vweird.f32 %v2745_v48  ;;  %v2747_v4 = vpop.eup %2746 }
 0x2b0   :  { %vm457_vm13 = vmor %vm455_vm12, %vm456_vm11  ;;  %v537_v6 = vadd.f32 1.0, %v2747_v4 }
 0x2b1   :  { %v452_v50 = vsub.f32 1.0, %v451_v49  ;;  %v2687_v49 = vld [vmem:[%s3754_s0 + $0x18] sm:$0xff] }
 0x2b2   :  { %2748 = vrcp.f32 %v537_v6  ;;  %v550_v18 = vand.u32 2147483648, %v537_v6  ;;  %vm544_vm0 = vweird.f32 %v537_v6  ;;  %v548_v19 = vand.u32 2147483647, %v537_v6 }
 0x2b3   :  { %v453_v51 = vmul.f32 %v2745_v48, %v452_v50 }
 0x2b4   :  { %v551_v28 = vor.u32 1.1754944e-38, %v550_v18  ;;  %vm549_vm3 = vcmp.eq.f32.partialorder %v548_v19, 8.507059e+37 }
 0x2b5   :  { %v454_v55 = vadd.f32 %v2745_v48, %v453_v51  ;;  %v2444_v51 = vmul.f32 -1.442695, %v3246_v20 }
 0x2b7   :  { %v458_v60 = vsel %vm457_vm13, %v2745_v48, %v454_v55 }
 0x2b8   :  { %v463_v1 = vsel %vm460_vm14, %v462_v61, %v458_v60  ;;  %v2749_v8 = vpop.eup %2748  ;;  %v2448_v61 = vmul.f32 -1.442695, %v3250_v38 }
 0x2b9   :  { %v540_v10 = vmul.f32 %v2749_v8, %v537_v6  ;;  %vm545_vm15 = vweird.f32 %v2749_v8  ;;  %v481_v39 = vmul.f32 0.0, %v463_v1 }
 0x2ba   :  { %vm546_vm2 = vmor %vm544_vm0, %vm545_vm15 }
 0x2bb   :  { %v541_v11 = vsub.f32 1.0, %v540_v10 }
 0x2bd   :  { %v542_v16 = vmul.f32 %v2749_v8, %v541_v11  ;;  %2338 = vmatmul.msk.bf16.gmra.mxu0 %vm84_vm1, %v2687_v49  ;;  %2342 = vmatmul.msk.bf16.gmra.mxu1 %vm84_vm1, %v2687_v49 }
 0x2bf   :  { %v543_v17 = vadd.f32 %v2749_v8, %v542_v16 }
 0x2c1   :  { %v547_v21 = vsel %vm546_vm2, %v2749_v8, %v543_v17 }
 0x2c2   :  { %v552_v32 = vsel %vm549_vm3, %v551_v28, %v547_v21 }
 0x2c3   :  { %v570_v46 = vmul.f32 %v552_v32, %v3188_v45 }
 0x2ef   :  { %v484_v63 = vpop.permute.xlu2 %483 }
 0x2f0   :  { %v486_v2 = vmul.f32 %v484_v63, %v463_v1 }
 0x2f2   :  { %488 = vrot.lane.b32.xlu0 %v486_v2, %s2919_s2 }
 0x317   :  { %v573_v31 = vpop.permute.xlu1 %572 }
 0x318   :  { %v575_v34 = vmul.f32 %v573_v31, %v552_v32 }
 0x31a   :  { %577 = vrot.lane.b32.xlu2 %v575_v34, %s2919_s2  ;;  %v116_v44 = vpop.f32.mrf.mxu0 }
 0x364   :  { %v489_v40 = vpop.permute.xlu0 %488 }
 0x365   :  { %v3261_v42 = vadd.f32 %v489_v40, %v481_v39 }
 0x367   :  { %2750 = vtanh.f32 %v3261_v42 }
 0x36d   :  { %v2751_v30 = vpop.eup %2750 }
 0x36e   :  { %494 = vrot.lane.b32.xlu2 %v2751_v30, %s2919_s2  ;;  %v145_v30 = vpop.f32.mrf.mxu1 }
 0x374   :  { %v578_v47 = vpop.permute.xlu2 %577 }
 0x375   :  { %v3271_v48 = vadd.f32 %v578_v47, %v570_v46  ;;  %v3313_v46 = vpop.f32.mrf.mxu0 }
 0x376   :  { %v3315_v47 = vpop.f32.mrf.mxu1 }
 0x377   :  { %2752 = vtanh.f32 %v3271_v48 }
 0x378   :  { %2754 = vpow2.f32 %v2444_v51 }
 0x37d   :  { %v2753_v50 = vpop.eup %2752  ;;  %v3317_v49 = vpop.f32.mrf.mxu0 }
 0x37e   :  { %583 = vrot.lane.b32.xlu1 %v2753_v50, %s2919_s2  ;;  %v2755_v45 = vpop.eup %2754  ;;  %v3319_v50 = vpop.f32.mrf.mxu1 }
 0x37f   :  { %v449_v33 = vadd.f32 1.0, %v2755_v45 }
 0x381   :  { %2756 = vrcp.f32 %v449_v33  ;;  %v476_v60 = vand.u32 2147483648, %v449_v33  ;;  %vm470_vm5 = vweird.f32 %v449_v33  ;;  %v474_v63 = vand.u32 2147483647, %v449_v33 }
 0x382   :  { %2758 = vpow2.f32 %v2448_v61 }
 0x383   :  { %v477_v2 = vor.u32 1.1754944e-38, %v476_v60  ;;  %vm475_vm1 = vcmp.eq.f32.partialorder %v474_v63, 8.507059e+37 }
 0x385   :  { %v3321_v51 = vpop.f32.mrf.mxu0 }
 0x386   :  { %v3323_v45 = vpop.f32.mrf.mxu1 }
 0x387   :  { %v2757_v54 = vpop.eup %2756 }
 0x388   :  { %v466_v55 = vmul.f32 %v2757_v54, %v449_v33  ;;  %vm471_vm4 = vweird.f32 %v2757_v54  ;;  %v2759_v10 = vpop.eup %2758 }
 0x389   :  { %vm472_vm6 = vmor %vm470_vm5, %vm471_vm4  ;;  %v538_v38 = vadd.f32 1.0, %v2759_v10 }
 0x38a   :  { %v467_v56 = vsub.f32 1.0, %v466_v55 }
 0x38b   :  { %2760 = vrcp.f32 %v538_v38  ;;  %v565_v21 = vand.u32 2147483648, %v538_v38  ;;  %vm559_vm9 = vweird.f32 %v538_v38  ;;  %v563_v28 = vand.u32 2147483647, %v538_v38 }
 0x38c   :  { %v468_v57 = vmul.f32 %v2757_v54, %v467_v56 }
 0x38d   :  { %v566_v32 = vor.u32 1.1754944e-38, %v565_v21  ;;  %vm564_vm12 = vcmp.eq.f32.partialorder %v563_v28, 8.507059e+37  ;;  %v3325_v33 = vpop.f32.mrf.mxu0 }
 0x38e   :  { %v469_v59 = vadd.f32 %v2757_v54, %v468_v57 }
 0x390   :  { %v473_v1 = vsel %vm472_vm6, %v2757_v54, %v469_v59  ;;  %v3327_v54 = vpop.f32.mrf.mxu1 }
 0x391   :  { %v478_v20 = vsel %vm475_vm1, %v477_v2, %v473_v1  ;;  %v2761_v11 = vpop.eup %2760 }
 0x392   :  { %v555_v16 = vmul.f32 %v2761_v11, %v538_v38  ;;  %vm560_vm8 = vweird.f32 %v2761_v11 }
 0x393   :  { %vm561_vm11 = vmor %vm559_vm9, %vm560_vm8 }
 0x394   :  { %v556_v17 = vsub.f32 1.0, %v555_v16 }
 0x395   :  { %v3329_v55 = vpop.f32.mrf.mxu0 }
 0x396   :  { %v557_v18 = vmul.f32 %v2761_v11, %v556_v17 }
 0x398   :  { %v558_v19 = vadd.f32 %v2761_v11, %v557_v18  ;;  %v3331_v56 = vpop.f32.mrf.mxu1 }
 0x39a   :  { %v562_v31 = vsel %vm561_vm11, %v2761_v11, %v558_v19 }
 0x39b   :  { %v567_v34 = vsel %vm564_vm12, %v566_v32, %v562_v31 }
 0x3c8   :  { %v495_v4 = vpop.permute.xlu2 %494 }
 0x3c9   :  { %v497_v6 = vmul.f32 %v495_v4, %v478_v20 }
 0x3cb   :  { %v498_v8 = vpack.c.bf16 %v497_v6, %v497_v6 }
 0x3cd   :  { %2449 = vmatmul.msk.bf16.vlgmr.msrb.gmra.mxu0 %vm218_vm10, %v498_v8  ;;  %2450 = vmatmul.msk.bf16.vlgmr.msrb.gmra.mxu1 %vm218_vm10, %v498_v8  ;;  %500 = vst.msk [vmem:[#allocation3] sm:$0xf] %vm499_vm7, %v498_v8 }
 0x3ce   :  { %832 = vmatpush.bf16.msrb.mxu0 %v3140_v27  ;;  %845 = vmatpush.bf16.msrb.mxu1 %v3137_v25 }
 0x3d2   :  { %833 = vmatpush.bf16.msrb.mxu0 %v3161_v36  ;;  %846 = vmatpush.bf16.msrb.mxu1 %v3158_v35 }
 0x3d6   :  { %834 = vmatpush.bf16.msrb.mxu0 %v3185_v43  ;;  %847 = vmatpush.bf16.msrb.mxu1 %v3181_v41 }
 0x3da   :  { %835 = vmatpush.bf16.msrb.mxu0 %v3214_v53  ;;  %848 = vmatpush.bf16.msrb.mxu1 %v3209_v52 }
 0x3f0   :  { %v584_v37 = vpop.permute.xlu1 %583 }
 0x3f1   :  { %v586_v39 = vmul.f32 %v584_v37, %v567_v34 }
 0x3f3   :  { %v587_v40 = vpack.c.bf16 %v586_v39, %v586_v39 }
 0x3f5   :  { %2451 = vmatmul.msk.bf16.vlgmr.msra.gmra.mxu2 %vm218_vm10, %v587_v40  ;;  %2452 = vmatmul.msk.bf16.vlgmr.msra.gmra.mxu3 %vm218_vm10, %v587_v40 }
 0x3f6   :  { %2455 = vmatmul.msk.bf16.vlgmr.msra.gmra.mxu0 %vm218_vm10, %v587_v40  ;;  %2456 = vmatmul.msk.bf16.vlgmr.msra.gmra.mxu1 %vm218_vm10, %v587_v40 }
 0x3f7   :  { %931 = vmatpush.bf16.msra.mxu3 %v2969_v3  ;;  %918 = vmatpush.bf16.msra.mxu2 %v2998_v13 }
 0x3f8   :  { %1006 = vmatpush.bf16.msra.mxu0 %v3070_v62  ;;  %1019 = vmatpush.bf16.msra.mxu1 %v3059_v58 }
 0x3fb   :  { %932 = vmatpush.bf16.msra.mxu3 %v2981_v7  ;;  %919 = vmatpush.bf16.msra.mxu2 %v3004_v15 }
 0x3fc   :  { %1007 = vmatpush.bf16.msra.mxu0 %v3089_v5  ;;  %1020 = vmatpush.bf16.msra.mxu1 %v3076_v0 }
 0x3ff   :  { %933 = vmatpush.bf16.msra.mxu3 %v3001_v14  ;;  %920 = vmatpush.bf16.msra.mxu2 %v3025_v26 }
 0x400   :  { %1008 = vmatpush.bf16.msra.mxu0 %v3109_v12  ;;  %1021 = vmatpush.bf16.msra.mxu1 %v3099_v9 }
 0x403   :  { %934 = vmatpush.bf16.msra.mxu3 %v3019_v23  ;;  %921 = vmatpush.bf16.msra.mxu2 %v3036_v29 }
 0x404   :  { %1009 = vmatpush.bf16.msra.mxu0 %v3135_v24  ;;  %1022 = vmatpush.bf16.msra.mxu1 %v3131_v22 }
 0x44a   :  { %v600_v57 = vpop.f32.mrf.mxu0  ;;  %v613_v59 = vpop.f32.mrf.mxu1 }
 0x452   :  { %v602_v60 = vpop.f32.mrf.mxu0  ;;  %v615_v61 = vpop.f32.mrf.mxu1 }
 0x473   :  { %v720_v63 = vpop.f32.mrf.mxu0  ;;  %v733_v1 = vpop.f32.mrf.mxu1 }
 0x474   :  { %v3333_v2 = vadd.f32 %v733_v1, %v145_v30  ;;  %v737_v19 = vadd.f32 %v720_v63, %v116_v44 }
 0x476   :  { %2762 = vtanh.f32 %v3333_v2  ;;  %v2457_v21 = vmul.f32 -1.442695, %v737_v19 }
 0x478   :  { %v629_v20 = vpop.f32.mrf.mxu2  ;;  %v642_v4 = vpop.f32.mrf.mxu3 }
 0x479   :  { %v630_v6 = vadd.f32 %v629_v20, %v600_v57  ;;  %v3336_v8 = vadd.f32 %v642_v4, %v613_v59 }
 0x47b   :  { %2764 = vtanh.f32 %v3336_v8  ;;  %v722_v10 = vpop.f32.mrf.mxu0  ;;  %v735_v38 = vpop.f32.mrf.mxu1  ;;  %v2453_v28 = vmul.f32 -1.442695, %v630_v6 }
 0x47c   :  { %v2763_v11 = vpop.eup %2762  ;;  %2766 = vpow2.f32 %v2457_v21 }
 0x47d   :  { %780 = vrot.lane.b32.xlu1 %v2763_v11, %s2919_s2  ;;  %2768 = vpow2.f32 %v2453_v28 }
 0x480   :  { %v631_v16 = vpop.f32.mrf.mxu2  ;;  %v644_v17 = vpop.f32.mrf.mxu3 }
 0x481   :  { %v2765_v18 = vpop.eup %2764 }
 0x482   :  { %687 = vrot.lane.b32.xlu0 %v2765_v18, %s2919_s2  ;;  %v2767_v31 = vpop.eup %2766 }
 0x483   :  { %v745_v32 = vadd.f32 1.0, %v2767_v31  ;;  %v2769_v34 = vpop.eup %2768 }
 0x484   :  { %v652_v37 = vadd.f32 1.0, %v2769_v34 }
 0x485   :  { %2770 = vrcp.f32 %v745_v32  ;;  %v758_v44 = vand.u32 2147483648, %v745_v32  ;;  %vm752_vm14 = vweird.f32 %v745_v32  ;;  %v756_v20 = vand.u32 2147483647, %v745_v32 }
 0x486   :  { %2772 = vrcp.f32 %v652_v37  ;;  %v665_v38 = vand.u32 2147483648, %v652_v37  ;;  %vm659_vm3 = vweird.f32 %v652_v37  ;;  %v663_v17 = vand.u32 2147483647, %v652_v37 }
 0x487   :  { %v759_v6 = vor.u32 1.1754944e-38, %v758_v44  ;;  %vm757_vm2 = vcmp.eq.f32.partialorder %v756_v20, 8.507059e+37 }
 0x488   :  { %v666_v21 = vor.u32 1.1754944e-38, %v665_v38  ;;  %vm664_vm5 = vcmp.eq.f32.partialorder %v663_v17, 8.507059e+37 }
 0x48b   :  { %v2771_v39 = vpop.eup %2770 }
 0x48c   :  { %v748_v40 = vmul.f32 %v2771_v39, %v745_v32  ;;  %v2773_v30 = vpop.eup %2772  ;;  %vm753_vm13 = vweird.f32 %v2771_v39 }
 0x48d   :  { %v655_v59 = vmul.f32 %v2773_v30, %v652_v37  ;;  %vm754_vm15 = vmor %vm752_vm14, %vm753_vm13  ;;  %vm660_vm0 = vweird.f32 %v2773_v30 }
 0x48e   :  { %v749_v57 = vsub.f32 1.0, %v748_v40  ;;  %vm661_vm4 = vmor %vm659_vm3, %vm660_vm0 }
 0x48f   :  { %v656_v61 = vsub.f32 1.0, %v655_v59 }
 0x490   :  { %v750_v60 = vmul.f32 %v2771_v39, %v749_v57 }
 0x491   :  { %v657_v63 = vmul.f32 %v2773_v30, %v656_v61  ;;  %v2454_v61 = vmul.f32 -1.442695, %v3336_v8 }
 0x492   :  { %v751_v1 = vadd.f32 %v2771_v39, %v750_v60 }
 0x493   :  { %v658_v10 = vadd.f32 %v2773_v30, %v657_v63 }
 0x494   :  { %v755_v4 = vsel %vm754_vm15, %v2771_v39, %v751_v1 }
 0x495   :  { %v760_v16 = vsel %vm757_vm2, %v759_v6, %v755_v4  ;;  %v662_v19 = vsel %vm661_vm4, %v2773_v30, %v658_v10 }
 0x496   :  { %v667_v31 = vsel %vm664_vm5, %v666_v21, %v662_v19  ;;  %v778_v30 = vmul.f32 %v760_v16, %v3271_v48 }
 0x497   :  { %v685_v34 = vmul.f32 %v667_v31, %v3261_v42  ;;  %v2458_v42 = vmul.f32 -1.442695, %v3333_v2 }
 0x4ef   :  { %v781_v11 = vpop.permute.xlu1 %780 }
 0x4f0   :  { %v783_v18 = vmul.f32 %v781_v11, %v760_v16 }
 0x4f2   :  { %785 = vrot.lane.b32.xlu0 %v783_v18, %s2919_s2 }
 0x4f4   :  { %v688_v28 = vpop.permute.xlu0 %687 }
 0x4f5   :  { %v690_v32 = vmul.f32 %v688_v28, %v667_v31 }
 0x4f7   :  { %692 = vrot.lane.b32.xlu2 %v690_v32, %s2919_s2 }
 0x551   :  { %v693_v39 = vpop.permute.xlu2 %692 }
 0x552   :  { %v3344_v40 = vadd.f32 %v693_v39, %v685_v34 }
 0x554   :  { %2774 = vtanh.f32 %v3344_v40 }
 0x55a   :  { %v2775_v37 = vpop.eup %2774 }
 0x55b   :  { %698 = vrot.lane.b32.xlu1 %v2775_v37, %s2919_s2 }
 0x564   :  { %v786_v57 = vpop.permute.xlu0 %785 }
 0x565   :  { %v3349_v59 = vadd.f32 %v786_v57, %v778_v30 }
 0x567   :  { %2776 = vtanh.f32 %v3349_v59 }
 0x568   :  { %2778 = vpow2.f32 %v2458_v42 }
 0x569   :  { %2780 = vpow2.f32 %v2454_v61 }
 0x56d   :  { %v2777_v60 = vpop.eup %2776 }
 0x56e   :  { %791 = vrot.lane.b32.xlu2 %v2777_v60, %s2919_s2  ;;  %v2779_v1 = vpop.eup %2778 }
 0x56f   :  { %v746_v44 = vadd.f32 1.0, %v2779_v1  ;;  %v2781_v63 = vpop.eup %2780 }
 0x570   :  { %v653_v20 = vadd.f32 1.0, %v2781_v63 }
 0x571   :  { %2782 = vrcp.f32 %v746_v44  ;;  %v773_v2 = vand.u32 2147483648, %v746_v44  ;;  %vm767_vm1 = vweird.f32 %v746_v44  ;;  %v771_v8 = vand.u32 2147483647, %v746_v44 }
 0x572   :  { %2784 = vrcp.f32 %v653_v20  ;;  %v680_v31 = vand.u32 2147483648, %v653_v20  ;;  %vm674_vm12 = vweird.f32 %v653_v20  ;;  %v678_v39 = vand.u32 2147483647, %v653_v20 }
 0x573   :  { %v774_v21 = vor.u32 1.1754944e-38, %v773_v2  ;;  %vm772_vm11 = vcmp.eq.f32.partialorder %v771_v8, 8.507059e+37 }
 0x574   :  { %v681_v60 = vor.u32 1.1754944e-38, %v680_v31  ;;  %vm679_vm14 = vcmp.eq.f32.partialorder %v678_v39, 8.507059e+37 }
 0x577   :  { %v2783_v48 = vpop.eup %2782 }
 0x578   :  { %v763_v4 = vmul.f32 %v2783_v48, %v746_v44  ;;  %v2785_v6 = vpop.eup %2784  ;;  %vm768_vm6 = vweird.f32 %v2783_v48 }
 0x579   :  { %v670_v38 = vmul.f32 %v2785_v6, %v653_v20  ;;  %vm769_vm8 = vmor %vm767_vm1, %vm768_vm6  ;;  %vm675_vm9 = vweird.f32 %v2785_v6 }
 0x57a   :  { %v764_v10 = vsub.f32 1.0, %v763_v4  ;;  %vm676_vm13 = vmor %vm674_vm12, %vm675_vm9 }
 0x57b   :  { %v671_v16 = vsub.f32 1.0, %v670_v38 }
 0x57c   :  { %v765_v11 = vmul.f32 %v2783_v48, %v764_v10 }
 0x57d   :  { %v672_v18 = vmul.f32 %v2785_v6, %v671_v16 }
 0x57e   :  { %v766_v17 = vadd.f32 %v2783_v48, %v765_v11 }
 0x57f   :  { %v673_v28 = vadd.f32 %v2785_v6, %v672_v18 }
 0x580   :  { %v770_v19 = vsel %vm769_vm8, %v2783_v48, %v766_v17 }
 0x581   :  { %v775_v32 = vsel %vm772_vm11, %v774_v21, %v770_v19  ;;  %v677_v30 = vsel %vm676_vm13, %v2785_v6, %v673_v28 }
 0x582   :  { %v682_v42 = vsel %vm679_vm14, %v681_v60, %v677_v30 }
 0x5c8   :  { %v792_v34 = vpop.permute.xlu2 %791 }
 0x5c9   :  { %v794_v37 = vmul.f32 %v792_v34, %v775_v32 }
 0x5cb   :  { %v795_v57 = vpack.c.bf16 %v794_v37, %v794_v37 }
 0x5cd   :  { %2461 = vmatmul.msk.bf16.vlgmr.msrb.gmra.mxu0 %vm218_vm10, %v795_v57  ;;  %2462 = vmatmul.msk.bf16.vlgmr.msrb.gmra.mxu1 %vm218_vm10, %v795_v57  ;;  %v699_v61 = vpop.permute.xlu1 %698 }
 0x5ce   :  { %v701_v1 = vmul.f32 %v699_v61, %v682_v42  ;;  %1125 = vmatpush.bf16.msrb.mxu0 %v2998_v13  ;;  %1138 = vmatpush.bf16.msrb.mxu1 %v2969_v3 }
 0x5d0   :  { %v3359_v44 = vpack.c.bf16 %v701_v1, %v701_v1 }
 0x5d2   :  { %2459 = vmatmul.msk.bf16.vlgmr.msrb.gmra.mxu2 %vm218_vm10, %v3359_v44  ;;  %2460 = vmatmul.msk.bf16.vlgmr.msrb.gmra.mxu3 %vm218_vm10, %v3359_v44 }
 0x5d3   :  { %1048 = vmatpush.bf16.msrb.mxu3 %v3137_v25  ;;  %1035 = vmatpush.bf16.msrb.mxu2 %v3140_v27 }
 0x5d4   :  { %1126 = vmatpush.bf16.msrb.mxu0 %v3004_v15  ;;  %1139 = vmatpush.bf16.msrb.mxu1 %v2981_v7 }
 0x5d7   :  { %1049 = vmatpush.bf16.msrb.mxu3 %v3158_v35  ;;  %1036 = vmatpush.bf16.msrb.mxu2 %v3161_v36 }
 0x5d8   :  { %1127 = vmatpush.bf16.msrb.mxu0 %v3025_v26  ;;  %1140 = vmatpush.bf16.msrb.mxu1 %v3001_v14 }
 0x5db   :  { %1050 = vmatpush.bf16.msrb.mxu3 %v3181_v41  ;;  %1037 = vmatpush.bf16.msrb.mxu2 %v3185_v43 }
 0x5dc   :  { %1128 = vmatpush.bf16.msrb.mxu0 %v3036_v29  ;;  %1141 = vmatpush.bf16.msrb.mxu1 %v3019_v23 }
 0x5df   :  { %1051 = vmatpush.bf16.msrb.mxu3 %v3209_v52  ;;  %1038 = vmatpush.bf16.msrb.mxu2 %v3214_v53 }
 0x5e2   :  { %2465 = vmatmul.msk.bf16.vlgmr.msra.gmra.mxu2 %vm218_vm10, %v795_v57  ;;  %2466 = vmatmul.msk.bf16.vlgmr.msra.gmra.mxu3 %vm218_vm10, %v795_v57 }
 0x5e3   :  { %1226 = vmatpush.bf16.msra.mxu3 %v3059_v58  ;;  %1213 = vmatpush.bf16.msra.mxu2 %v3070_v62 }
 0x5e7   :  { %1227 = vmatpush.bf16.msra.mxu3 %v3076_v0  ;;  %1214 = vmatpush.bf16.msra.mxu2 %v3089_v5 }
 0x5eb   :  { %1228 = vmatpush.bf16.msra.mxu3 %v3099_v9  ;;  %1215 = vmatpush.bf16.msra.mxu2 %v3109_v12 }
 0x5ef   :  { %1229 = vmatpush.bf16.msra.mxu3 %v3131_v22  ;;  %1216 = vmatpush.bf16.msra.mxu2 %v3135_v24 }
 0x64a   :  { %v837_v63 = vpop.f32.mrf.mxu0  ;;  %v850_v20 = vpop.f32.mrf.mxu1 }
 0x652   :  { %v839_v48 = vpop.f32.mrf.mxu0  ;;  %v852_v4 = vpop.f32.mrf.mxu1 }
 0x655   :  { %v808_v6 = vpop.f32.mrf.mxu2  ;;  %v821_v10 = vpop.f32.mrf.mxu3 }
 0x656   :  { %v838_v38 = vadd.f32 %v837_v63, %v808_v6  ;;  %v3389_v11 = vadd.f32 %v850_v20, %v821_v10 }
 0x658   :  { %2786 = vtanh.f32 %v3389_v11  ;;  %v2463_v32 = vmul.f32 -1.442695, %v838_v38 }
 0x65d   :  { %v810_v16 = vpop.f32.mrf.mxu2  ;;  %v823_v17 = vpop.f32.mrf.mxu3 }
 0x65e   :  { %v2787_v2 = vpop.eup %2786 }
 0x65f   :  { %895 = vrot.lane.b32.xlu1 %v2787_v2, %s2919_s2 }
 0x665   :  { %v923_v18 = vpop.f32.mrf.mxu2  ;;  %v936_v8 = vpop.f32.mrf.mxu3 }
 0x666   :  { %v3394_v19 = vadd.f32 %v936_v8, %v3315_v47  ;;  %v940_v39 = vadd.f32 %v923_v18, %v3313_v46 }
 0x668   :  { %2788 = vtanh.f32 %v3394_v19  ;;  %v2467_v30 = vmul.f32 -1.442695, %v940_v39 }
 0x669   :  { %2790 = vpow2.f32 %v2463_v32 }
 0x66d   :  { %v925_v21 = vpop.f32.mrf.mxu2  ;;  %v938_v28 = vpop.f32.mrf.mxu3 }
 0x66e   :  { %v2789_v31 = vpop.eup %2788 }
 0x66f   :  { %983 = vrot.lane.b32.xlu0 %v2789_v31, %s2919_s2  ;;  %v2791_v34 = vpop.eup %2790 }
 0x670   :  { %v860_v37 = vadd.f32 1.0, %v2791_v34 }
 0x672   :  { %2792 = vrcp.f32 %v860_v37  ;;  %v873_v48 = vand.u32 2147483648, %v860_v37  ;;  %vm867_vm0 = vweird.f32 %v860_v37  ;;  %v871_v4 = vand.u32 2147483647, %v860_v37 }
 0x673   :  { %2794 = vpow2.f32 %v2467_v30 }
 0x674   :  { %v874_v10 = vor.u32 1.1754944e-38, %v873_v48  ;;  %vm872_vm3 = vcmp.eq.f32.partialorder %v871_v4, 8.507059e+37  ;;  %v2468_v4 = vmul.f32 -1.442695, %v3394_v19 }
 0x678   :  { %v2793_v57 = vpop.eup %2792 }
 0x679   :  { %v2795_v60 = vpop.eup %2794  ;;  %v863_v47 = vmul.f32 %v2793_v57, %v860_v37  ;;  %vm868_vm15 = vweird.f32 %v2793_v57 }
 0x67a   :  { %v948_v42 = vadd.f32 1.0, %v2795_v60  ;;  %vm869_vm2 = vmor %vm867_vm0, %vm868_vm15 }
 0x67b   :  { %v864_v61 = vsub.f32 1.0, %v863_v47 }
 0x67c   :  { %2796 = vrcp.f32 %v948_v42  ;;  %v961_v21 = vand.u32 2147483648, %v948_v42  ;;  %vm955_vm5 = vweird.f32 %v948_v42  ;;  %v959_v28 = vand.u32 2147483647, %v948_v42 }
 0x67d   :  { %v865_v1 = vmul.f32 %v2793_v57, %v864_v61 }
 0x67e   :  { %v962_v32 = vor.u32 1.1754944e-38, %v961_v21  ;;  %vm960_vm1 = vcmp.eq.f32.partialorder %v959_v28, 8.507059e+37 }
 0x67f   :  { %v866_v63 = vadd.f32 %v2793_v57, %v865_v1 }
 0x681   :  { %v870_v6 = vsel %vm869_vm2, %v2793_v57, %v866_v63 }
 0x682   :  { %v2797_v20 = vpop.eup %2796  ;;  %v875_v16 = vsel %vm872_vm3, %v874_v10, %v870_v6 }
 0x683   :  { %v951_v46 = vmul.f32 %v2797_v20, %v948_v42  ;;  %vm956_vm4 = vweird.f32 %v2797_v20  ;;  %v893_v47 = vmul.f32 %v875_v16, %v3344_v40 }
 0x684   :  { %vm957_vm6 = vmor %vm955_vm5, %vm956_vm4 }
 0x685   :  { %v952_v2 = vsub.f32 1.0, %v951_v46 }
 0x687   :  { %v953_v18 = vmul.f32 %v2797_v20, %v952_v2 }
 0x689   :  { %v954_v8 = vadd.f32 %v2797_v20, %v953_v18 }
 0x68b   :  { %v958_v31 = vsel %vm957_vm6, %v2797_v20, %v954_v8 }
 0x68c   :  { %v963_v39 = vsel %vm960_vm1, %v962_v32, %v958_v31 }
 0x68d   :  { %v981_v30 = vmul.f32 %v963_v39, %v3349_v59  ;;  %v2464_v59 = vmul.f32 -1.442695, %v3389_v11 }
 0x6d1   :  { %v896_v38 = vpop.permute.xlu1 %895 }
 0x6d2   :  { %v898_v17 = vmul.f32 %v896_v38, %v875_v16 }
 0x6d4   :  { %900 = vrot.lane.b32.xlu0 %v898_v17, %s2919_s2 }
 0x6e1   :  { %v984_v34 = vpop.permute.xlu0 %983 }
 0x6e2   :  { %v986_v37 = vmul.f32 %v984_v34, %v963_v39 }
 0x6e4   :  { %988 = vrot.lane.b32.xlu2 %v986_v37, %s2919_s2 }
 0x73e   :  { %v989_v57 = vpop.permute.xlu2 %988 }
 0x73f   :  { %v3402_v60 = vadd.f32 %v989_v57, %v981_v30 }
 0x741   :  { %2798 = vtanh.f32 %v3402_v60 }
 0x746   :  { %v901_v61 = vpop.permute.xlu0 %900 }
 0x747   :  { %v2799_v42 = vpop.eup %2798  ;;  %v3406_v1 = vadd.f32 %v901_v61, %v893_v47 }
 0x748   :  { %994 = vrot.lane.b32.xlu1 %v2799_v42, %s2919_s2 }
 0x749   :  { %2800 = vtanh.f32 %v3406_v1 }
 0x74a   :  { %2802 = vpow2.f32 %v2464_v59 }
 0x74f   :  { %v2801_v63 = vpop.eup %2800 }
 0x750   :  { %906 = vrot.lane.b32.xlu2 %v2801_v63, %s2919_s2  ;;  %v2803_v20 = vpop.eup %2802 }
 0x751   :  { %v861_v48 = vadd.f32 1.0, %v2803_v20 }
 0x753   :  { %2804 = vrcp.f32 %v861_v48  ;;  %v888_v18 = vand.u32 2147483648, %v861_v48  ;;  %vm882_vm9 = vweird.f32 %v861_v48  ;;  %v886_v11 = vand.u32 2147483647, %v861_v48 }
 0x754   :  { %2806 = vpow2.f32 %v2468_v4 }
 0x755   :  { %v889_v28 = vor.u32 1.1754944e-38, %v888_v18  ;;  %vm887_vm12 = vcmp.eq.f32.partialorder %v886_v11, 8.507059e+37 }
 0x759   :  { %v2805_v40 = vpop.eup %2804 }
 0x75a   :  { %v2807_v6 = vpop.eup %2806  ;;  %v878_v46 = vmul.f32 %v2805_v40, %v861_v48  ;;  %vm883_vm8 = vweird.f32 %v2805_v40 }
 0x75b   :  { %v949_v10 = vadd.f32 1.0, %v2807_v6  ;;  %vm884_vm11 = vmor %vm882_vm9, %vm883_vm8 }
 0x75c   :  { %v879_v38 = vsub.f32 1.0, %v878_v46 }
 0x75d   :  { %2808 = vrcp.f32 %v949_v10  ;;  %v976_v57 = vand.u32 2147483648, %v949_v10  ;;  %vm970_vm14 = vweird.f32 %v949_v10  ;;  %v974_v47 = vand.u32 2147483647, %v949_v10 }
 0x75e   :  { %v880_v16 = vmul.f32 %v2805_v40, %v879_v38 }
 0x75f   :  { %v977_v42 = vor.u32 1.1754944e-38, %v976_v57  ;;  %vm975_vm0 = vcmp.eq.f32.partialorder %v974_v47, 8.507059e+37 }
 0x760   :  { %v881_v17 = vadd.f32 %v2805_v40, %v880_v16 }
 0x762   :  { %v885_v8 = vsel %vm884_vm11, %v2805_v40, %v881_v17 }
 0x763   :  { %v2809_v2 = vpop.eup %2808  ;;  %v890_v19 = vsel %vm887_vm12, %v889_v28, %v885_v8 }
 0x764   :  { %v966_v21 = vmul.f32 %v2809_v2, %v949_v10  ;;  %vm971_vm13 = vweird.f32 %v2809_v2 }
 0x765   :  { %vm972_vm15 = vmor %vm970_vm14, %vm971_vm13 }
 0x766   :  { %v967_v34 = vsub.f32 1.0, %v966_v21 }
 0x768   :  { %v968_v37 = vmul.f32 %v2809_v2, %v967_v34 }
 0x76a   :  { %v969_v30 = vadd.f32 %v2809_v2, %v968_v37 }
 0x76c   :  { %v973_v61 = vsel %vm972_vm15, %v2809_v2, %v969_v30 }
 0x76d   :  { %v978_v63 = vsel %vm975_vm0, %v977_v42, %v973_v61 }
 0x7aa   :  { %v907_v31 = vpop.permute.xlu2 %906 }
 0x7ab   :  { %v909_v32 = vmul.f32 %v907_v31, %v890_v19 }
 0x7ad   :  { %v910_v39 = vpack.c.bf16 %v909_v32, %v909_v32 }
 0x7af   :  { %2469 = vmatmul.msk.bf16.vlgmr.msra.gmra.mxu0 %vm218_vm10, %v910_v39  ;;  %2470 = vmatmul.msk.bf16.vlgmr.msra.gmra.mxu1 %vm218_vm10, %v910_v39  ;;  %911 = vst.msk [vmem:[#allocation3 + $0x4] sm:$0xf] %vm499_vm7, %v910_v39 }
 0x7b0   :  { %1242 = vmatpush.bf16.msra.mxu0 %v3140_v27  ;;  %1255 = vmatpush.bf16.msra.mxu1 %v3137_v25 }
 0x7b4   :  { %1243 = vmatpush.bf16.msra.mxu0 %v3161_v36  ;;  %1256 = vmatpush.bf16.msra.mxu1 %v3158_v35 }
 0x7b8   :  { %1244 = vmatpush.bf16.msra.mxu0 %v3185_v43  ;;  %1257 = vmatpush.bf16.msra.mxu1 %v3181_v41 }
 0x7ba   :  { %v995_v59 = vpop.permute.xlu1 %994 }
 0x7bb   :  { %v997_v20 = vmul.f32 %v995_v59, %v978_v63 }
 0x7bc   :  { %1245 = vmatpush.bf16.msra.mxu0 %v3214_v53  ;;  %1258 = vmatpush.bf16.msra.mxu1 %v3209_v52 }
 0x7bd   :  { %v998_v48 = vpack.c.bf16 %v997_v20, %v997_v20 }
 0x7bf   :  { %2471 = vmatmul.msk.bf16.vlgmr.msrb.gmra.mxu2 %vm218_vm10, %v998_v48  ;;  %2472 = vmatmul.msk.bf16.vlgmr.msrb.gmra.mxu3 %vm218_vm10, %v998_v48 }
 0x7c0   :  { %2475 = vmatmul.msk.bf16.vlgmr.msrb.gmra.mxu0 %vm218_vm10, %v998_v48  ;;  %2476 = vmatmul.msk.bf16.vlgmr.msrb.gmra.mxu1 %vm218_vm10, %v998_v48 }
 0x7c1   :  { %1341 = vmatpush.bf16.msrb.mxu3 %v2969_v3  ;;  %1328 = vmatpush.bf16.msrb.mxu2 %v2998_v13 }
 0x7c2   :  { %1416 = vmatpush.bf16.msrb.mxu0 %v3070_v62  ;;  %1429 = vmatpush.bf16.msrb.mxu1 %v3059_v58 }
 0x7c5   :  { %1342 = vmatpush.bf16.msrb.mxu3 %v2981_v7  ;;  %1329 = vmatpush.bf16.msrb.mxu2 %v3004_v15 }
 0x7c6   :  { %1417 = vmatpush.bf16.msrb.mxu0 %v3089_v5  ;;  %1430 = vmatpush.bf16.msrb.mxu1 %v3076_v0 }
 0x7c9   :  { %1343 = vmatpush.bf16.msrb.mxu3 %v3001_v14  ;;  %1330 = vmatpush.bf16.msrb.mxu2 %v3025_v26 }
 0x7ca   :  { %1418 = vmatpush.bf16.msrb.mxu0 %v3109_v12  ;;  %1431 = vmatpush.bf16.msrb.mxu1 %v3099_v9 }
 0x7cd   :  { %1344 = vmatpush.bf16.msrb.mxu3 %v3019_v23  ;;  %1331 = vmatpush.bf16.msrb.mxu2 %v3036_v29 }
 0x7ce   :  { %1419 = vmatpush.bf16.msrb.mxu0 %v3135_v24  ;;  %1432 = vmatpush.bf16.msrb.mxu1 %v3131_v22 }
 0x82c   :  { %v1011_v4 = vpop.f32.mrf.mxu0  ;;  %v1024_v40 = vpop.f32.mrf.mxu1 }
 0x834   :  { %v1013_v6 = vpop.f32.mrf.mxu0  ;;  %v1026_v46 = vpop.f32.mrf.mxu1 }
 0x83d   :  { %v1130_v10 = vpop.f32.mrf.mxu0  ;;  %v1143_v38 = vpop.f32.mrf.mxu1 }
 0x83e   :  { %v3445_v16 = vadd.f32 %v1143_v38, %v3319_v50  ;;  %v1147_v50 = vadd.f32 %v1130_v10, %v3317_v49 }
 0x840   :  { %2810 = vtanh.f32 %v3445_v16  ;;  %v2477_v34 = vmul.f32 -1.442695, %v1147_v50 }
 0x842   :  { %v1040_v17 = vpop.f32.mrf.mxu2  ;;  %v1053_v2 = vpop.f32.mrf.mxu3 }
 0x843   :  { %v1041_v18 = vadd.f32 %v1040_v17, %v1011_v4  ;;  %v3448_v11 = vadd.f32 %v1053_v2, %v1024_v40 }
 0x845   :  { %2812 = vtanh.f32 %v3448_v11  ;;  %v1132_v8 = vpop.f32.mrf.mxu0  ;;  %v1145_v21 = vpop.f32.mrf.mxu1  ;;  %v2473_v39 = vmul.f32 -1.442695, %v1041_v18 }
 0x846   :  { %v2811_v28 = vpop.eup %2810  ;;  %2814 = vpow2.f32 %v2477_v34 }
 0x847   :  { %1190 = vrot.lane.b32.xlu1 %v2811_v28, %s2919_s2  ;;  %2816 = vpow2.f32 %v2473_v39 }
 0x84a   :  { %v1042_v19 = vpop.f32.mrf.mxu2  ;;  %v1055_v31 = vpop.f32.mrf.mxu3 }
 0x84b   :  { %v2813_v32 = vpop.eup %2812 }
 0x84c   :  { %1098 = vrot.lane.b32.xlu0 %v2813_v32, %s2919_s2  ;;  %v2815_v37 = vpop.eup %2814 }
 0x84d   :  { %v1155_v30 = vadd.f32 1.0, %v2815_v37  ;;  %v2817_v57 = vpop.eup %2816 }
 0x84e   :  { %v1063_v47 = vadd.f32 1.0, %v2817_v57 }
 0x84f   :  { %2818 = vrcp.f32 %v1155_v30  ;;  %v1168_v49 = vand.u32 2147483648, %v1155_v30  ;;  %vm1162_vm3 = vweird.f32 %v1155_v30  ;;  %v1166_v46 = vand.u32 2147483647, %v1155_v30 }
 0x850   :  { %2820 = vrcp.f32 %v1063_v47  ;;  %v1076_v2 = vand.u32 2147483648, %v1063_v47  ;;  %vm1070_vm1 = vweird.f32 %v1063_v47  ;;  %v1074_v21 = vand.u32 2147483647, %v1063_v47 }
 0x851   :  { %v1169_v38 = vor.u32 1.1754944e-38, %v1168_v49  ;;  %vm1167_vm6 = vcmp.eq.f32.partialorder %v1166_v46, 8.507059e+37 }
 0x852   :  { %v1077_v31 = vor.u32 1.1754944e-38, %v1076_v2  ;;  %vm1075_vm9 = vcmp.eq.f32.partialorder %v1074_v21, 8.507059e+37 }
 0x855   :  { %v2819_v61 = vpop.eup %2818 }
 0x856   :  { %v1158_v42 = vmul.f32 %v2819_v61, %v1155_v30  ;;  %v2821_v63 = vpop.eup %2820  ;;  %vm1163_vm2 = vweird.f32 %v2819_v61 }
 0x857   :  { %v1066_v20 = vmul.f32 %v2821_v63, %v1063_v47  ;;  %vm1164_vm4 = vmor %vm1162_vm3, %vm1163_vm2  ;;  %vm1071_vm5 = vweird.f32 %v2821_v63 }
 0x858   :  { %v1159_v59 = vsub.f32 1.0, %v1158_v42  ;;  %vm1072_vm8 = vmor %vm1070_vm1, %vm1071_vm5 }
 0x859   :  { %v1067_v4 = vsub.f32 1.0, %v1066_v20 }
 0x85a   :  { %v1160_v48 = vmul.f32 %v2819_v61, %v1159_v59  ;;  %v2474_v59 = vmul.f32 -1.442695, %v3448_v11 }
 0x85b   :  { %v1068_v6 = vmul.f32 %v2821_v63, %v1067_v4 }
 0x85c   :  { %v1161_v40 = vadd.f32 %v2819_v61, %v1160_v48 }
 0x85d   :  { %v1069_v17 = vadd.f32 %v2821_v63, %v1068_v6 }
 0x85e   :  { %v1165_v10 = vsel %vm1164_vm4, %v2819_v61, %v1161_v40 }
 0x85f   :  { %v1170_v8 = vsel %vm1167_vm6, %v1169_v38, %v1165_v10  ;;  %v1073_v19 = vsel %vm1072_vm8, %v2821_v63, %v1069_v17 }
 0x860   :  { %v1078_v50 = vsel %vm1075_vm9, %v1077_v31, %v1073_v19  ;;  %v1188_v47 = vmul.f32 %v1170_v8, %v3402_v60 }
 0x861   :  { %v1096_v39 = vmul.f32 %v1078_v50, %v3406_v1  ;;  %v2478_v1 = vmul.f32 -1.442695, %v3445_v16 }
 0x8b9   :  { %v1191_v18 = vpop.permute.xlu1 %1190 }
 0x8ba   :  { %v1193_v28 = vmul.f32 %v1191_v18, %v1170_v8 }
 0x8bc   :  { %1195 = vrot.lane.b32.xlu0 %v1193_v28, %s2919_s2 }
 0x8be   :  { %v1099_v32 = vpop.permute.xlu0 %1098 }
 0x8bf   :  { %v1101_v34 = vmul.f32 %v1099_v32, %v1078_v50 }
 0x8c1   :  { %1103 = vrot.lane.b32.xlu2 %v1101_v34, %s2919_s2 }
 0x91b   :  { %v1104_v37 = vpop.permute.xlu2 %1103 }
 0x91c   :  { %v3457_v30 = vadd.f32 %v1104_v37, %v1096_v39 }
 0x91e   :  { %2822 = vtanh.f32 %v3457_v30 }
 0x924   :  { %v2823_v57 = vpop.eup %2822 }
 0x925   :  { %1109 = vrot.lane.b32.xlu1 %v2823_v57, %s2919_s2 }
 0x92e   :  { %v1196_v61 = vpop.permute.xlu0 %1195 }
 0x92f   :  { %v3462_v42 = vadd.f32 %v1196_v61, %v1188_v47 }
 0x931   :  { %2824 = vtanh.f32 %v3462_v42 }
 0x932   :  { %2826 = vpow2.f32 %v2478_v1 }
 0x933   :  { %2828 = vpow2.f32 %v2474_v59 }
 0x937   :  { %v2825_v63 = vpop.eup %2824 }
 0x938   :  { %1201 = vrot.lane.b32.xlu2 %v2825_v63, %s2919_s2  ;;  %v2827_v20 = vpop.eup %2826 }
 0x939   :  { %v1156_v48 = vadd.f32 1.0, %v2827_v20  ;;  %v2829_v4 = vpop.eup %2828 }
 0x93a   :  { %v1064_v40 = vadd.f32 1.0, %v2829_v4 }
 0x93b   :  { %2830 = vrcp.f32 %v1156_v48  ;;  %v1183_v16 = vand.u32 2147483648, %v1156_v48  ;;  %vm1177_vm12 = vweird.f32 %v1156_v48  ;;  %v1181_v11 = vand.u32 2147483647, %v1156_v48 }
 0x93c   :  { %2832 = vrcp.f32 %v1064_v40  ;;  %v1091_v19 = vand.u32 2147483648, %v1064_v40  ;;  %vm1085_vm0 = vweird.f32 %v1064_v40  ;;  %v1089_v50 = vand.u32 2147483647, %v1064_v40 }
 0x93d   :  { %v1184_v21 = vor.u32 1.1754944e-38, %v1183_v16  ;;  %vm1182_vm15 = vcmp.eq.f32.partialorder %v1181_v11, 8.507059e+37 }
 0x93e   :  { %v1092_v57 = vor.u32 1.1754944e-38, %v1091_v19  ;;  %vm1090_vm3 = vcmp.eq.f32.partialorder %v1089_v50, 8.507059e+37 }
 0x941   :  { %v2831_v60 = vpop.eup %2830 }
 0x942   :  { %v1173_v49 = vmul.f32 %v2831_v60, %v1156_v48  ;;  %v2833_v6 = vpop.eup %2832  ;;  %vm1178_vm11 = vweird.f32 %v2831_v60 }
 0x943   :  { %v1081_v10 = vmul.f32 %v2833_v6, %v1064_v40  ;;  %vm1179_vm13 = vmor %vm1177_vm12, %vm1178_vm11  ;;  %vm1086_vm14 = vweird.f32 %v2833_v6 }
 0x944   :  { %v1174_v46 = vsub.f32 1.0, %v1173_v49  ;;  %vm1087_vm2 = vmor %vm1085_vm0, %vm1086_vm14 }
 0x945   :  { %v1082_v17 = vsub.f32 1.0, %v1081_v10 }
 0x946   :  { %v1175_v38 = vmul.f32 %v2831_v60, %v1174_v46 }
 0x947   :  { %v1083_v18 = vmul.f32 %v2833_v6, %v1082_v17 }
 0x948   :  { %v1176_v2 = vadd.f32 %v2831_v60, %v1175_v38 }
 0x949   :  { %v1084_v28 = vadd.f32 %v2833_v6, %v1083_v18 }
 0x94a   :  { %v1180_v8 = vsel %vm1179_vm13, %v2831_v60, %v1176_v2 }
 0x94b   :  { %v1185_v31 = vsel %vm1182_vm15, %v1184_v21, %v1180_v8  ;;  %v1088_v39 = vsel %vm1087_vm2, %v2833_v6, %v1084_v28 }
 0x94c   :  { %v1093_v47 = vsel %vm1090_vm3, %v1092_v57, %v1088_v39 }
 0x992   :  { %v1202_v32 = vpop.permute.xlu2 %1201 }
 0x993   :  { %v1204_v34 = vmul.f32 %v1202_v32, %v1185_v31 }
 0x995   :  { %v1205_v37 = vpack.c.bf16 %v1204_v34, %v1204_v34 }
 0x997   :  { %2481 = vmatmul.msk.bf16.vlgmr.msra.gmra.mxu0 %vm218_vm10, %v1205_v37  ;;  %2482 = vmatmul.msk.bf16.vlgmr.msra.gmra.mxu1 %vm218_vm10, %v1205_v37  ;;  %v1110_v61 = vpop.permute.xlu1 %1109 }
 0x998   :  { %v1112_v63 = vmul.f32 %v1110_v61, %v1093_v47  ;;  %1535 = vmatpush.bf16.msra.mxu0 %v2998_v13  ;;  %1548 = vmatpush.bf16.msra.mxu1 %v2969_v3 }
 0x99a   :  { %v3472_v1 = vpack.c.bf16 %v1112_v63, %v1112_v63 }
 0x99c   :  { %2479 = vmatmul.msk.bf16.vlgmr.msra.gmra.mxu2 %vm218_vm10, %v3472_v1  ;;  %2480 = vmatmul.msk.bf16.vlgmr.msra.gmra.mxu3 %vm218_vm10, %v3472_v1 }
 0x99d   :  { %1458 = vmatpush.bf16.msra.mxu3 %v3137_v25  ;;  %1445 = vmatpush.bf16.msra.mxu2 %v3140_v27 }
 0x99e   :  { %1536 = vmatpush.bf16.msra.mxu0 %v3004_v15  ;;  %1549 = vmatpush.bf16.msra.mxu1 %v2981_v7 }
 0x9a1   :  { %1459 = vmatpush.bf16.msra.mxu3 %v3158_v35  ;;  %1446 = vmatpush.bf16.msra.mxu2 %v3161_v36 }
 0x9a2   :  { %1537 = vmatpush.bf16.msra.mxu0 %v3025_v26  ;;  %1550 = vmatpush.bf16.msra.mxu1 %v3001_v14 }
 0x9a5   :  { %1460 = vmatpush.bf16.msra.mxu3 %v3181_v41  ;;  %1447 = vmatpush.bf16.msra.mxu2 %v3185_v43 }
 0x9a6   :  { %1538 = vmatpush.bf16.msra.mxu0 %v3036_v29  ;;  %1551 = vmatpush.bf16.msra.mxu1 %v3019_v23 }
 0x9a9   :  { %1461 = vmatpush.bf16.msra.mxu3 %v3209_v52  ;;  %1448 = vmatpush.bf16.msra.mxu2 %v3214_v53 }
 0x9ac   :  { %2485 = vmatmul.msk.bf16.vlgmr.msrb.gmra.mxu2 %vm218_vm10, %v1205_v37  ;;  %2486 = vmatmul.msk.bf16.vlgmr.msrb.gmra.mxu3 %vm218_vm10, %v1205_v37 }
 0x9ad   :  { %1636 = vmatpush.bf16.msrb.mxu3 %v3059_v58  ;;  %1623 = vmatpush.bf16.msrb.mxu2 %v3070_v62 }
 0x9b1   :  { %1637 = vmatpush.bf16.msrb.mxu3 %v3076_v0  ;;  %1624 = vmatpush.bf16.msrb.mxu2 %v3089_v5 }
 0x9b5   :  { %1638 = vmatpush.bf16.msrb.mxu3 %v3099_v9  ;;  %1625 = vmatpush.bf16.msrb.mxu2 %v3109_v12 }
 0x9b9   :  { %1639 = vmatpush.bf16.msrb.mxu3 %v3131_v22  ;;  %1626 = vmatpush.bf16.msrb.mxu2 %v3135_v24 }
 0xa14   :  { %v1247_v59 = vpop.f32.mrf.mxu0  ;;  %v1260_v20 = vpop.f32.mrf.mxu1 }
 0xa1c   :  { %v1249_v48 = vpop.f32.mrf.mxu0  ;;  %v1262_v4 = vpop.f32.mrf.mxu1 }
 0xa1f   :  { %v1218_v40 = vpop.f32.mrf.mxu2  ;;  %v1231_v60 = vpop.f32.mrf.mxu3 }
 0xa20   :  { %v1248_v49 = vadd.f32 %v1247_v59, %v1218_v40  ;;  %v3502_v6 = vadd.f32 %v1260_v20, %v1231_v60 }
 0xa22   :  { %2834 = vtanh.f32 %v3502_v6  ;;  %v2483_v21 = vmul.f32 -1.442695, %v1248_v49 }
 0xa27   :  { %v1220_v46 = vpop.f32.mrf.mxu2  ;;  %v1233_v10 = vpop.f32.mrf.mxu3 }
 0xa28   :  { %v2835_v38 = vpop.eup %2834 }
 0xa29   :  { %1305 = vrot.lane.b32.xlu1 %v2835_v38, %s2919_s2 }
 0xa2f   :  { %v1333_v17 = vpop.f32.mrf.mxu2  ;;  %v1346_v2 = vpop.f32.mrf.mxu3 }
 0xa30   :  { %v3507_v16 = vadd.f32 %v1346_v2, %v3323_v45  ;;  %v1350_v19 = vadd.f32 %v1333_v17, %v3321_v51 }
 0xa32   :  { %2836 = vtanh.f32 %v3507_v16  ;;  %v2487_v32 = vmul.f32 -1.442695, %v1350_v19 }
 0xa33   :  { %2838 = vpow2.f32 %v2483_v21 }
 0xa37   :  { %v1335_v18 = vpop.f32.mrf.mxu2  ;;  %v1348_v11 = vpop.f32.mrf.mxu3 }
 0xa38   :  { %v2837_v8 = vpop.eup %2836 }
 0xa39   :  { %1393 = vrot.lane.b32.xlu0 %v2837_v8, %s2919_s2  ;;  %v2839_v28 = vpop.eup %2838 }
 0xa3a   :  { %v1270_v31 = vadd.f32 1.0, %v2839_v28 }
 0xa3c   :  { %2840 = vrcp.f32 %v1270_v31  ;;  %v1283_v63 = vand.u32 2147483648, %v1270_v31  ;;  %vm1277_vm5 = vweird.f32 %v1270_v31  ;;  %v1281_v59 = vand.u32 2147483647, %v1270_v31 }
 0xa3d   :  { %2842 = vpow2.f32 %v2487_v32 }
 0xa3e   :  { %v1284_v48 = vor.u32 1.1754944e-38, %v1283_v63  ;;  %vm1282_vm1 = vcmp.eq.f32.partialorder %v1281_v59, 8.507059e+37 }
 0xa42   :  { %v2841_v50 = vpop.eup %2840 }
 0xa43   :  { %v2843_v34 = vpop.eup %2842  ;;  %v1273_v45 = vmul.f32 %v2841_v50, %v1270_v31  ;;  %vm1278_vm4 = vweird.f32 %v2841_v50 }
 0xa44   :  { %v1358_v39 = vadd.f32 1.0, %v2843_v34  ;;  %vm1279_vm6 = vmor %vm1277_vm5, %vm1278_vm4 }
 0xa45   :  { %v1274_v37 = vsub.f32 1.0, %v1273_v45 }
 0xa46   :  { %2844 = vrcp.f32 %v1358_v39  ;;  %v1371_v38 = vand.u32 2147483648, %v1358_v39  ;;  %vm1365_vm9 = vweird.f32 %v1358_v39  ;;  %v1369_v17 = vand.u32 2147483647, %v1358_v39 }
 0xa47   :  { %v1275_v57 = vmul.f32 %v2841_v50, %v1274_v37 }
 0xa48   :  { %v1372_v18 = vor.u32 1.1754944e-38, %v1371_v38  ;;  %vm1370_vm12 = vcmp.eq.f32.partialorder %v1369_v17, 8.507059e+37 }
 0xa49   :  { %v1276_v47 = vadd.f32 %v2841_v50, %v1275_v57 }
 0xa4b   :  { %v1280_v20 = vsel %vm1279_vm6, %v2841_v50, %v1276_v47  ;;  %v2488_v47 = vmul.f32 -1.442695, %v3507_v16 }
 0xa4c   :  { %v2845_v61 = vpop.eup %2844  ;;  %v1285_v40 = vsel %vm1282_vm1, %v1284_v48, %v1280_v20 }
 0xa4d   :  { %v1361_v51 = vmul.f32 %v2845_v61, %v1358_v39  ;;  %vm1366_vm8 = vweird.f32 %v2845_v61  ;;  %v1303_v32 = vmul.f32 %v1285_v40, %v3457_v30 }
 0xa4e   :  { %vm1367_vm11 = vmor %vm1365_vm9, %vm1366_vm8 }
 0xa4f   :  { %v1362_v49 = vsub.f32 1.0, %v1361_v51 }
 0xa51   :  { %v1363_v46 = vmul.f32 %v2845_v61, %v1362_v49 }
 0xa53   :  { %v1364_v10 = vadd.f32 %v2845_v61, %v1363_v46 }
 0xa55   :  { %v1368_v2 = vsel %vm1367_vm11, %v2845_v61, %v1364_v10 }
 0xa56   :  { %v1373_v8 = vsel %vm1370_vm12, %v1372_v18, %v1368_v2 }
 0xa57   :  { %v1391_v28 = vmul.f32 %v1373_v8, %v3462_v42  ;;  %v2484_v42 = vmul.f32 -1.442695, %v3502_v6 }
 0xa9b   :  { %v1306_v4 = vpop.permute.xlu1 %1305 }
 0xa9c   :  { %v1308_v60 = vmul.f32 %v1306_v4, %v1285_v40 }
 0xa9e   :  { %1310 = vrot.lane.b32.xlu0 %v1308_v60, %s2919_s2 }
 0xaab   :  { %v1394_v11 = vpop.permute.xlu0 %1393 }
 0xaac   :  { %v1396_v21 = vmul.f32 %v1394_v11, %v1373_v8 }
 0xaae   :  { %1398 = vrot.lane.b32.xlu2 %v1396_v21, %s2919_s2 }
 0xb08   :  { %v1399_v19 = vpop.permute.xlu2 %1398 }
 0xb09   :  { %v3515_v31 = vadd.f32 %v1399_v19, %v1391_v28 }
 0xb0b   :  { %2846 = vtanh.f32 %v3515_v31 }
 0xb10   :  { %v1311_v50 = vpop.permute.xlu0 %1310 }
 0xb11   :  { %v2847_v34 = vpop.eup %2846  ;;  %v3519_v45 = vadd.f32 %v1311_v50, %v1303_v32 }
 0xb12   :  { %1404 = vrot.lane.b32.xlu1 %v2847_v34, %s2919_s2 }
 0xb13   :  { %2848 = vtanh.f32 %v3519_v45 }
 0xb14   :  { %2850 = vpow2.f32 %v2484_v42 }
 0xb19   :  { %v2849_v39 = vpop.eup %2848 }
 0xb1a   :  { %1316 = vrot.lane.b32.xlu2 %v2849_v39, %s2919_s2  ;;  %v2851_v37 = vpop.eup %2850 }
 0xb1b   :  { %v1271_v57 = vadd.f32 1.0, %v2851_v37 }
 0xb1d   :  { %2852 = vrcp.f32 %v1271_v57  ;;  %v1298_v40 = vand.u32 2147483648, %v1271_v57  ;;  %vm1292_vm14 = vweird.f32 %v1271_v57  ;;  %v1296_v6 = vand.u32 2147483647, %v1271_v57 }
 0xb1e   :  { %2854 = vpow2.f32 %v2488_v47 }
 0xb1f   :  { %v1299_v46 = vor.u32 1.1754944e-38, %v1298_v40  ;;  %vm1297_vm0 = vcmp.eq.f32.partialorder %v1296_v6, 8.507059e+37 }
 0xb23   :  { %v2853_v30 = vpop.eup %2852 }
 0xb24   :  { %v2855_v61 = vpop.eup %2854  ;;  %v1288_v63 = vmul.f32 %v2853_v30, %v1271_v57  ;;  %vm1293_vm13 = vweird.f32 %v2853_v30 }
 0xb25   :  { %v1359_v59 = vadd.f32 1.0, %v2855_v61  ;;  %vm1294_vm15 = vmor %vm1292_vm14, %vm1293_vm13 }
 0xb26   :  { %v1289_v20 = vsub.f32 1.0, %v1288_v63 }
 0xb27   :  { %2856 = vrcp.f32 %v1359_v59  ;;  %v1386_v8 = vand.u32 2147483648, %v1359_v59  ;;  %vm1380_vm3 = vweird.f32 %v1359_v59  ;;  %v1384_v21 = vand.u32 2147483647, %v1359_v59 }
 0xb28   :  { %v1290_v51 = vmul.f32 %v2853_v30, %v1289_v20 }
 0xb29   :  { %v1387_v19 = vor.u32 1.1754944e-38, %v1386_v8  ;;  %vm1385_vm5 = vcmp.eq.f32.partialorder %v1384_v21, 8.507059e+37 }
 0xb2a   :  { %v1291_v48 = vadd.f32 %v2853_v30, %v1290_v51 }
 0xb2c   :  { %v1295_v60 = vsel %vm1294_vm15, %v2853_v30, %v1291_v48 }
 0xb2d   :  { %v2857_v4 = vpop.eup %2856  ;;  %v1300_v16 = vsel %vm1297_vm0, %v1299_v46, %v1295_v60 }
 0xb2e   :  { %v1376_v49 = vmul.f32 %v2857_v4, %v1359_v59  ;;  %vm1381_vm2 = vweird.f32 %v2857_v4 }
 0xb2f   :  { %vm1382_vm4 = vmor %vm1380_vm3, %vm1381_vm2 }
 0xb30   :  { %v1377_v17 = vsub.f32 1.0, %v1376_v49 }
 0xb32   :  { %v1378_v18 = vmul.f32 %v2857_v4, %v1377_v17 }
 0xb34   :  { %v1379_v11 = vadd.f32 %v2857_v4, %v1378_v18 }
 0xb36   :  { %v1383_v28 = vsel %vm1382_vm4, %v2857_v4, %v1379_v11 }
 0xb37   :  { %v1388_v32 = vsel %vm1385_vm5, %v1387_v19, %v1383_v28 }
 0xb74   :  { %v1317_v10 = vpop.permute.xlu2 %1316 }
 0xb75   :  { %v1319_v38 = vmul.f32 %v1317_v10, %v1300_v16 }
 0xb77   :  { %v1320_v2 = vpack.c.bf16 %v1319_v38, %v1319_v38 }
 0xb79   :  { %2489 = vmatmul.msk.bf16.vlgmr.msrb.gmra.mxu0 %vm218_vm10, %v1320_v2  ;;  %2490 = vmatmul.msk.bf16.vlgmr.msrb.gmra.mxu1 %vm218_vm10, %v1320_v2  ;;  %1321 = vst.msk [vmem:[#allocation3 + $0x8] sm:$0xf] %vm499_vm7, %v1320_v2 }
 0xb7a   :  { %1652 = vmatpush.bf16.msrb.mxu0 %v3140_v27  ;;  %1665 = vmatpush.bf16.msrb.mxu1 %v3137_v25 }
 0xb7e   :  { %1653 = vmatpush.bf16.msrb.mxu0 %v3161_v36  ;;  %1666 = vmatpush.bf16.msrb.mxu1 %v3158_v35 }
 0xb82   :  { %1654 = vmatpush.bf16.msrb.mxu0 %v3185_v43  ;;  %1667 = vmatpush.bf16.msrb.mxu1 %v3181_v41 }
 0xb84   :  { %v1405_v50 = vpop.permute.xlu1 %1404 }
 0xb85   :  { %v1407_v34 = vmul.f32 %v1405_v50, %v1388_v32 }
 0xb86   :  { %1655 = vmatpush.bf16.msrb.mxu0 %v3214_v53  ;;  %1668 = vmatpush.bf16.msrb.mxu1 %v3209_v52 }
 0xb87   :  { %v1408_v39 = vpack.c.bf16 %v1407_v34, %v1407_v34 }
 0xb89   :  { %2491 = vmatmul.msk.bf16.vlgmr.msra.gmra.mxu2 %vm218_vm10, %v1408_v39  ;;  %2492 = vmatmul.msk.bf16.vlgmr.msra.gmra.mxu3 %vm218_vm10, %v1408_v39 }
 0xb8a   :  { %2495 = vmatmul.msk.bf16.vlgmr.msra.gmra.mxu0 %vm218_vm10, %v1408_v39  ;;  %2496 = vmatmul.msk.bf16.vlgmr.msra.gmra.mxu1 %vm218_vm10, %v1408_v39 }
 0xb8b   :  { %1751 = vmatpush.bf16.msra.mxu3 %v2969_v3  ;;  %1738 = vmatpush.bf16.msra.mxu2 %v2998_v13 }
 0xb8c   :  { %1826 = vmatpush.bf16.msra.mxu0 %v3070_v62  ;;  %1839 = vmatpush.bf16.msra.mxu1 %v3059_v58 }
 0xb8f   :  { %1752 = vmatpush.bf16.msra.mxu3 %v2981_v7  ;;  %1739 = vmatpush.bf16.msra.mxu2 %v3004_v15 }
 0xb90   :  { %1827 = vmatpush.bf16.msra.mxu0 %v3089_v5  ;;  %1840 = vmatpush.bf16.msra.mxu1 %v3076_v0 }
 0xb93   :  { %1753 = vmatpush.bf16.msra.mxu3 %v3001_v14  ;;  %1740 = vmatpush.bf16.msra.mxu2 %v3025_v26 }
 0xb94   :  { %1828 = vmatpush.bf16.msra.mxu0 %v3109_v12  ;;  %1841 = vmatpush.bf16.msra.mxu1 %v3099_v9 }
 0xb97   :  { %1754 = vmatpush.bf16.msra.mxu3 %v3019_v23  ;;  %1741 = vmatpush.bf16.msra.mxu2 %v3036_v29 }
 0xb98   :  { %1829 = vmatpush.bf16.msra.mxu0 %v3135_v24  ;;  %1842 = vmatpush.bf16.msra.mxu1 %v3131_v22 }
 0xbf6   :  { %v1421_v3 = vpop.f32.mrf.mxu0  ;;  %v1434_v7 = vpop.f32.mrf.mxu1 }
 0xbfe   :  { %v1423_v13 = vpop.f32.mrf.mxu0  ;;  %v1436_v15 = vpop.f32.mrf.mxu1 }
 0xc07   :  { %v1540_v58 = vpop.f32.mrf.mxu0  ;;  %v1553_v14 = vpop.f32.mrf.mxu1 }
 0xc08   :  { %v3558_v26 = vadd.f32 %v1553_v14, %v3327_v54  ;;  %v1557_v54 = vadd.f32 %v1540_v58, %v3325_v33 }
 0xc0a   :  { %2858 = vtanh.f32 %v3558_v26  ;;  %v2497_v37 = vmul.f32 -1.442695, %v1557_v54 }
 0xc0c   :  { %v1450_v62 = vpop.f32.mrf.mxu2  ;;  %v1463_v0 = vpop.f32.mrf.mxu3 }
 0xc0d   :  { %v1451_v23 = vadd.f32 %v1450_v62, %v1421_v3  ;;  %v3561_v5 = vadd.f32 %v1463_v0, %v1434_v7 }
 0xc0f   :  { %2860 = vtanh.f32 %v3561_v5  ;;  %v1542_v29 = vpop.f32.mrf.mxu0  ;;  %v1555_v9 = vpop.f32.mrf.mxu1  ;;  %v2493_v57 = vmul.f32 -1.442695, %v1451_v23  ;;  %v2494_v62 = vmul.f32 -1.442695, %v3561_v5 }
 0xc10   :  { %v2859_v12 = vpop.eup %2858  ;;  %2862 = vpow2.f32 %v2497_v37 }
 0xc11   :  { %1600 = vrot.lane.b32.xlu1 %v2859_v12, %s2919_s2  ;;  %2864 = vpow2.f32 %v2493_v57 }
 0xc14   :  { %v1452_v22 = vpop.f32.mrf.mxu2  ;;  %v1465_v24 = vpop.f32.mrf.mxu3 }
 0xc15   :  { %v2861_v42 = vpop.eup %2860 }
 0xc16   :  { %1508 = vrot.lane.b32.xlu0 %v2861_v42, %s2919_s2  ;;  %v2863_v47 = vpop.eup %2862 }
 0xc17   :  { %v1565_v30 = vadd.f32 1.0, %v2863_v47  ;;  %v2865_v61 = vpop.eup %2864 }
 0xc18   :  { %v1473_v63 = vadd.f32 1.0, %v2865_v61 }
 0xc19   :  { %2866 = vrcp.f32 %v1565_v30  ;;  %v1578_v33 = vand.u32 2147483648, %v1565_v30  ;;  %vm1572_vm1 = vweird.f32 %v1565_v30  ;;  %v1576_v46 = vand.u32 2147483647, %v1565_v30 }
 0xc1a   :  { %2868 = vrcp.f32 %v1473_v63  ;;  %v1486_v17 = vand.u32 2147483648, %v1473_v63  ;;  %vm1480_vm12 = vweird.f32 %v1473_v63  ;;  %v1484_v11 = vand.u32 2147483647, %v1473_v63 }
 0xc1b   :  { %v1579_v10 = vor.u32 1.1754944e-38, %v1578_v33  ;;  %vm1577_vm11 = vcmp.eq.f32.partialorder %v1576_v46, 8.507059e+37 }
 0xc1c   :  { %v1487_v28 = vor.u32 1.1754944e-38, %v1486_v17  ;;  %vm1485_vm14 = vcmp.eq.f32.partialorder %v1484_v11, 8.507059e+37 }
 0xc1f   :  { %v2867_v59 = vpop.eup %2866 }
 0xc20   :  { %v1568_v20 = vmul.f32 %v2867_v59, %v1565_v30  ;;  %v2869_v51 = vpop.eup %2868  ;;  %vm1573_vm6 = vweird.f32 %v2867_v59 }
 0xc21   :  { %v1476_v4 = vmul.f32 %v2869_v51, %v1473_v63  ;;  %vm1574_vm8 = vmor %vm1572_vm1, %vm1573_vm6  ;;  %vm1481_vm9 = vweird.f32 %v2869_v51 }
 0xc22   :  { %v1569_v48 = vsub.f32 1.0, %v1568_v20  ;;  %vm1482_vm13 = vmor %vm1480_vm12, %vm1481_vm9 }
 0xc23   :  { %v1477_v6 = vsub.f32 1.0, %v1476_v4 }
 0xc24   :  { %v1570_v40 = vmul.f32 %v2867_v59, %v1569_v48 }
 0xc25   :  { %v1478_v49 = vmul.f32 %v2869_v51, %v1477_v6 }
 0xc26   :  { %v1571_v60 = vadd.f32 %v2867_v59, %v1570_v40 }
 0xc27   :  { %v1479_v38 = vadd.f32 %v2869_v51, %v1478_v49 }
 0xc28   :  { %v1575_v16 = vsel %vm1574_vm8, %v2867_v59, %v1571_v60 }
 0xc29   :  { %v1580_v18 = vsel %vm1577_vm11, %v1579_v10, %v1575_v16  ;;  %v1483_v21 = vsel %vm1482_vm13, %v2869_v51, %v1479_v38 }
 0xc2a   :  { %v1488_v32 = vsel %vm1485_vm14, %v1487_v28, %v1483_v21  ;;  %v1598_v13 = vmul.f32 %v1580_v18, %v3515_v31 }
 0xc2b   :  { %v1506_v34 = vmul.f32 %v1488_v32, %v3519_v45  ;;  %v2498_v45 = vmul.f32 -1.442695, %v3558_v26 }
 0xc83   :  { %v1601_v2 = vpop.permute.xlu1 %1600 }
 0xc84   :  { %v1603_v8 = vmul.f32 %v1601_v2, %v1580_v18 }
 0xc86   :  { %1605 = vrot.lane.b32.xlu0 %v1603_v8, %s2919_s2 }
 0xc88   :  { %v1509_v19 = vpop.permute.xlu0 %1508 }
 0xc89   :  { %v1511_v50 = vmul.f32 %v1509_v19, %v1488_v32 }
 0xc8b   :  { %1513 = vrot.lane.b32.xlu2 %v1511_v50, %s2919_s2 }
 0xce5   :  { %v1514_v39 = vpop.permute.xlu2 %1513 }
 0xce6   :  { %v3570_v3 = vadd.f32 %v1514_v39, %v1506_v34 }
 0xce8   :  { %2870 = vtanh.f32 %v3570_v3 }
 0xcee   :  { %v2871_v7 = vpop.eup %2870 }
 0xcef   :  { %1519 = vrot.lane.b32.xlu1 %v2871_v7, %s2919_s2 }
 0xcf8   :  { %v1606_v15 = vpop.permute.xlu0 %1605 }
 0xcf9   :  { %v3575_v58 = vadd.f32 %v1606_v15, %v1598_v13 }
 0xcfb   :  { %2872 = vtanh.f32 %v3575_v58 }
 0xcfc   :  { %2874 = vpow2.f32 %v2498_v45 }
 0xcfd   :  { %2876 = vpow2.f32 %v2494_v62 }
 0xd01   :  { %v2873_v14 = vpop.eup %2872 }
 0xd02   :  { %1611 = vrot.lane.b32.xlu2 %v2873_v14, %s2919_s2  ;;  %v2875_v0 = vpop.eup %2874 }
 0xd03   :  { %v1566_v23 = vadd.f32 1.0, %v2875_v0  ;;  %v2877_v29 = vpop.eup %2876 }
 0xd04   :  { %v1474_v9 = vadd.f32 1.0, %v2877_v29 }
 0xd05   :  { %2878 = vrcp.f32 %v1566_v23  ;;  %v1593_v26 = vand.u32 2147483648, %v1566_v23  ;;  %vm1587_vm0 = vweird.f32 %v1566_v23  ;;  %v1591_v5 = vand.u32 2147483647, %v1566_v23 }
 0xd06   :  { %2880 = vrcp.f32 %v1474_v9  ;;  %v1501_v59 = vand.u32 2147483648, %v1474_v9  ;;  %vm1495_vm5 = vweird.f32 %v1474_v9  ;;  %v1499_v48 = vand.u32 2147483647, %v1474_v9 }
 0xd07   :  { %v1594_v61 = vor.u32 1.1754944e-38, %v1593_v26  ;;  %vm1592_vm4 = vcmp.eq.f32.partialorder %v1591_v5, 8.507059e+37 }
 0xd08   :  { %v1502_v60 = vor.u32 1.1754944e-38, %v1501_v59  ;;  %vm1500_vm1 = vcmp.eq.f32.partialorder %v1499_v48, 8.507059e+37 }
 0xd0b   :  { %v2879_v31 = vpop.eup %2878 }
 0xd0c   :  { %v1583_v12 = vmul.f32 %v2879_v31, %v1566_v23  ;;  %v2881_v22 = vpop.eup %2880  ;;  %vm1588_vm15 = vweird.f32 %v2879_v31 }
 0xd0d   :  { %v1491_v42 = vmul.f32 %v2881_v22, %v1474_v9  ;;  %vm1589_vm2 = vmor %vm1587_vm0, %vm1588_vm15  ;;  %vm1496_vm3 = vweird.f32 %v2881_v22 }
 0xd0e   :  { %v1584_v24 = vsub.f32 1.0, %v1583_v12  ;;  %vm1497_vm6 = vmor %vm1495_vm5, %vm1496_vm3 }
 0xd0f   :  { %v1492_v37 = vsub.f32 1.0, %v1491_v42 }
 0xd10   :  { %v1585_v54 = vmul.f32 %v2879_v31, %v1584_v24 }
 0xd11   :  { %v1493_v47 = vmul.f32 %v2881_v22, %v1492_v37 }
 0xd12   :  { %v1586_v57 = vadd.f32 %v2879_v31, %v1585_v54 }
 0xd13   :  { %v1494_v63 = vadd.f32 %v2881_v22, %v1493_v47 }
 0xd14   :  { %v1590_v30 = vsel %vm1589_vm2, %v2879_v31, %v1586_v57 }
 0xd15   :  { %v1595_v20 = vsel %vm1592_vm4, %v1594_v61, %v1590_v30  ;;  %v1498_v40 = vsel %vm1497_vm6, %v2881_v22, %v1494_v63 }
 0xd16   :  { %v1503_v33 = vsel %vm1500_vm1, %v1502_v60, %v1498_v40 }
 0xd5c   :  { %v1612_v51 = vpop.permute.xlu2 %1611 }
 0xd5d   :  { %v1614_v4 = vmul.f32 %v1612_v51, %v1595_v20 }
 0xd5f   :  { %v1615_v6 = vpack.c.bf16 %v1614_v4, %v1614_v4 }
 0xd61   :  { %2501 = vmatmul.msk.bf16.vlgmr.msrb.gmra.mxu0 %vm218_vm10, %v1615_v6  ;;  %2502 = vmatmul.msk.bf16.vlgmr.msrb.gmra.mxu1 %vm218_vm10, %v1615_v6  ;;  %v1520_v49 = vpop.permute.xlu1 %1519 }
 0xd62   :  { %v1522_v46 = vmul.f32 %v1520_v49, %v1503_v33 }
 0xd64   :  { %v3583_v16 = vpack.c.bf16 %v1522_v46, %v1522_v46 }
 0xd66   :  { %2499 = vmatmul.msk.bf16.vlgmr.msrb.gmra.mxu2 %vm218_vm10, %v3583_v16  ;;  %2500 = vmatmul.msk.bf16.vlgmr.msrb.gmra.mxu3 %vm218_vm10, %v3583_v16 }
 0xd67   :  { %1868 = vmatpush.bf16.msrb.mxu3 %v3137_v25  ;;  %1855 = vmatpush.bf16.msrb.mxu2 %v3140_v27 }
 0xd6b   :  { %1869 = vmatpush.bf16.msrb.mxu3 %v3158_v35  ;;  %1856 = vmatpush.bf16.msrb.mxu2 %v3161_v36 }
 0xd6f   :  { %1870 = vmatpush.bf16.msrb.mxu3 %v3181_v41  ;;  %1857 = vmatpush.bf16.msrb.mxu2 %v3185_v43 }
 0xd73   :  { %1871 = vmatpush.bf16.msrb.mxu3 %v3209_v52  ;;  %1858 = vmatpush.bf16.msrb.mxu2 %v3214_v53 }
 0xd76   :  { %2505 = vmatmul.msk.bf16.vlgmr.msra.gmra.mxu2 %vm218_vm10, %v1615_v6  ;;  %2506 = vmatmul.msk.bf16.vlgmr.msra.gmra.mxu3 %vm218_vm10, %v1615_v6 }
 0xdde   :  { %v1657_v10 = vpop.f32.mrf.mxu0  ;;  %v1670_v25 = vpop.f32.mrf.mxu1 }
 0xde6   :  { %v1659_v38 = vpop.f32.mrf.mxu0  ;;  %v1672_v27 = vpop.f32.mrf.mxu1 }
 0xde9   :  { %v1628_v17 = vpop.f32.mrf.mxu2  ;;  %v1641_v35 = vpop.f32.mrf.mxu3 }
 0xdea   :  { %v1658_v2 = vadd.f32 %v1657_v10, %v1628_v17  ;;  %v3599_v36 = vadd.f32 %v1670_v25, %v1641_v35 }
 0xdec   :  { %2882 = vtanh.f32 %v3599_v36  ;;  %v2503_v19 = vmul.f32 -1.442695, %v1658_v2  ;;  %v2504_v33 = vmul.f32 -1.442695, %v3599_v36 }
 0xdf1   :  { %v1630_v41 = vpop.f32.mrf.mxu2  ;;  %v1643_v43 = vpop.f32.mrf.mxu3 }
 0xdf2   :  { %v2883_v52 = vpop.eup %2882 }
 0xdf3   :  { %1715 = vrot.lane.b32.xlu1 %v2883_v52, %s2919_s2 }
 0xdf9   :  { %v1743_v53 = vpop.f32.mrf.mxu2  ;;  %v1756_v18 = vpop.f32.mrf.mxu3 }
 0xdfa   :  { %v3604_v11 = vadd.f32 %v1756_v18, %v3331_v56  ;;  %v1760_v50 = vadd.f32 %v1743_v53, %v3329_v55 }
 0xdfc   :  { %2884 = vtanh.f32 %v3604_v11  ;;  %v2507_v39 = vmul.f32 -1.442695, %v1760_v50  ;;  %v2508_v46 = vmul.f32 -1.442695, %v3604_v11 }
 0xdfd   :  { %2886 = vpow2.f32 %v2503_v19 }
 0xe01   :  { %v1745_v8 = vpop.f32.mrf.mxu2  ;;  %v1758_v21 = vpop.f32.mrf.mxu3 }
 0xe02   :  { %v2885_v28 = vpop.eup %2884 }
 0xe03   :  { %1803 = vrot.lane.b32.xlu0 %v2885_v28, %s2919_s2  ;;  %v2887_v32 = vpop.eup %2886 }
 0xe04   :  { %v1680_v34 = vadd.f32 1.0, %v2887_v32 }
 0xe06   :  { %2888 = vrcp.f32 %v1680_v34  ;;  %v1693_v23 = vand.u32 2147483648, %v1680_v34  ;;  %vm1687_vm9 = vweird.f32 %v1680_v34  ;;  %v1691_v29 = vand.u32 2147483647, %v1680_v34 }
 0xe07   :  { %2890 = vpow2.f32 %v2507_v39 }
 0xe08   :  { %v1694_v31 = vor.u32 1.1754944e-38, %v1693_v23  ;;  %vm1692_vm12 = vcmp.eq.f32.partialorder %v1691_v29, 8.507059e+37 }
 0xe0c   :  { %v2889_v7 = vpop.eup %2888 }
 0xe0d   :  { %v2891_v13 = vpop.eup %2890  ;;  %v1683_v56 = vmul.f32 %v2889_v7, %v1680_v34  ;;  %vm1688_vm8 = vweird.f32 %v2889_v7 }
 0xe0e   :  { %v1768_v15 = vadd.f32 1.0, %v2891_v13  ;;  %vm1689_vm11 = vmor %vm1687_vm9, %vm1688_vm8 }
 0xe0f   :  { %v1684_v14 = vsub.f32 1.0, %v1683_v56 }
 0xe10   :  { %2892 = vrcp.f32 %v1768_v15  ;;  %v1781_v57 = vand.u32 2147483648, %v1768_v15  ;;  %vm1775_vm14 = vweird.f32 %v1768_v15  ;;  %v1779_v26 = vand.u32 2147483647, %v1768_v15 }
 0xe11   :  { %v1685_v45 = vmul.f32 %v2889_v7, %v1684_v14 }
 0xe12   :  { %v1782_v5 = vor.u32 1.1754944e-38, %v1781_v57  ;;  %vm1780_vm0 = vcmp.eq.f32.partialorder %v1779_v26, 8.507059e+37 }
 0xe13   :  { %v1686_v62 = vadd.f32 %v2889_v7, %v1685_v45 }
 0xe15   :  { %v1690_v9 = vsel %vm1689_vm11, %v2889_v7, %v1686_v62 }
 0xe16   :  { %v2893_v0 = vpop.eup %2892  ;;  %v1695_v22 = vsel %vm1692_vm12, %v1694_v31, %v1690_v9 }
 0xe17   :  { %v1771_v55 = vmul.f32 %v2893_v0, %v1768_v15  ;;  %vm1776_vm13 = vweird.f32 %v2893_v0  ;;  %v1713_v48 = vmul.f32 %v1695_v22, %v3570_v3 }
 0xe18   :  { %vm1777_vm15 = vmor %vm1775_vm14, %vm1776_vm13  ;;  %vm707_vm14 = vcmask 1043968  }
 0xe19   :  { %v1772_v42 = vsub.f32 1.0, %v1771_v55 }
 0xe1b   :  { %v1773_v54 = vmul.f32 %v2893_v0, %v1772_v42 }
 0xe1d   :  { %v1774_v37 = vadd.f32 %v2893_v0, %v1773_v54 }
 0xe1f   :  { %v1778_v47 = vsel %vm1777_vm15, %v2893_v0, %v1774_v37 }
 0xe20   :  { %v1783_v61 = vsel %vm1780_vm0, %v1782_v5, %v1778_v47 }
 0xe21   :  { %v1801_v59 = vmul.f32 %v1783_v61, %v3575_v58 }
 0xe65   :  { %v1716_v12 = vpop.permute.xlu1 %1715 }
 0xe66   :  { %v1718_v24 = vmul.f32 %v1716_v12, %v1695_v22 }
 0xe68   :  { %1720 = vrot.lane.b32.xlu0 %v1718_v24, %s2919_s2 }
 0xe75   :  { %v1804_v30 = vpop.permute.xlu0 %1803 }
 0xe76   :  { %v1806_v63 = vmul.f32 %v1804_v30, %v1783_v61 }
 0xe78   :  { %1808 = vrot.lane.b32.xlu2 %v1806_v63, %s2919_s2 }
 0xed2   :  { %v1809_v20 = vpop.permute.xlu2 %1808 }
 0xed3   :  { %v1811_v51 = vadd.f32 %v1809_v20, %v1801_v59 }
 0xed5   :  { %2894 = vtanh.f32 %v1811_v51 }
 0xeda   :  { %v1721_v4 = vpop.permute.xlu0 %1720 }
 0xedb   :  { %v2895_v40 = vpop.eup %2894  ;;  %v3613_v6 = vadd.f32 %v1721_v4, %v1713_v48 }
 0xedc   :  { %1814 = vrot.lane.b32.xlu1 %v2895_v40, %s2919_s2  ;;  %v2695_v40 = vld [vmem:[%s3757_s5 + $0x38] sm:$0xff] }
 0xedd   :  { %2896 = vtanh.f32 %v3613_v6  ;;  %2211 = vmatpush.bf16.msrb.mxu0 %v2695_v40 }
 0xede   :  { %2898 = vpow2.f32 %v2504_v33  ;;  %v2694_v33 = vld [vmem:[%s3757_s5 + $0x30] sm:$0xff] }
 0xee1   :  { %2212 = vmatpush.bf16.msrb.mxu0 %v2694_v33 }
 0xee3   :  { %v2897_v60 = vpop.eup %2896 }
 0xee4   :  { %1726 = vrot.lane.b32.xlu2 %v2897_v60, %s2919_s2  ;;  %v2899_v58 = vpop.eup %2898  ;;  %v2703_v60 = vld [vmem:[%s3757_s5 + $0x78] sm:$0xff] }
 0xee5   :  { %v1681_v49 = vadd.f32 1.0, %v2899_v58  ;;  %2224 = vmatpush.bf16.msrb.mxu1 %v2703_v60  ;;  %v2702_v58 = vld [vmem:[%s3757_s5 + $0x70] sm:$0xff] }
 0xee7   :  { %2900 = vrcp.f32 %v1681_v49  ;;  %v1708_v41 = vand.u32 2147483648, %v1681_v49  ;;  %vm1702_vm3 = vweird.f32 %v1681_v49  ;;  %v1706_v36 = vand.u32 2147483647, %v1681_v49 }
 0xee8   :  { %2902 = vpow2.f32 %v2508_v46  ;;  %v2701_v46 = vld [vmem:[%s3757_s5 + $0x68] sm:$0xff] }
 0xee9   :  { %v1709_v53 = vor.u32 1.1754944e-38, %v1708_v41  ;;  %vm1707_vm5 = vcmp.eq.f32.partialorder %v1706_v36, 8.507059e+37  ;;  %2225 = vmatpush.bf16.msrb.mxu1 %v2702_v58  ;;  %v2691_v41 = vld [vmem:[%s3757_s5 + $0x18] sm:$0xff]  ;;  %v2690_v36 = vld [vmem:[%s3757_s5 + $0x10] sm:$0xff] }
 0xeed   :  { %v2901_v3 = vpop.eup %2900  ;;  %2226 = vmatpush.bf16.msrb.mxu1 %v2701_v46 }
 0xeee   :  { %v2903_v10 = vpop.eup %2902  ;;  %v1698_v25 = vmul.f32 %v2901_v3, %v1681_v49  ;;  %vm1703_vm2 = vweird.f32 %v2901_v3  ;;  %v2693_v49 = vld [vmem:[%s3757_s5 + $0x28] sm:$0xff] }
 0xeef   :  { %v1769_v38 = vadd.f32 1.0, %v2903_v10  ;;  %vm1704_vm4 = vmor %vm1702_vm3, %vm1703_vm2  ;;  %2213 = vmatpush.bf16.msrb.mxu0 %v2693_v49 }
 0xef0   :  { %v1699_v27 = vsub.f32 1.0, %v1698_v25 }
 0xef1   :  { %2904 = vrcp.f32 %v1769_v38  ;;  %v1796_v50 = vand.u32 2147483648, %v1769_v38  ;;  %vm1790_vm1 = vweird.f32 %v1769_v38  ;;  %v1794_v34 = vand.u32 2147483647, %v1769_v38 }
 0xef2   :  { %v1700_v17 = vmul.f32 %v2901_v3, %v1699_v27 }
 0xef3   :  { %v1797_v7 = vor.u32 1.1754944e-38, %v1796_v50  ;;  %vm1795_vm9 = vcmp.eq.f32.partialorder %v1794_v34, 8.507059e+37  ;;  %v2719_v50 = vld [vmem:[%s3757_s5 + $0xf8] sm:$0xff]  ;;  %v2710_v34 = vld [vmem:[%s3757_s5 + $0xb0] sm:$0xff] }
 0xef4   :  { %v1701_v35 = vadd.f32 %v2901_v3, %v1700_v17  ;;  %2250 = vmatpush.bf16.msra.mxu3 %v2719_v50 }
 0xef6   :  { %v1705_v43 = vsel %vm1704_vm4, %v2901_v3, %v1701_v35  ;;  %vm2313_vm4 = vcmask 1024  }
 0xef7   :  { %v2905_v2 = vpop.eup %2904  ;;  %v1710_v18 = vsel %vm1707_vm5, %v1709_v53, %v1705_v43  ;;  %v2698_v43 = vld [vmem:[%s3757_s5 + $0x50] sm:$0xff] }
 0xef8   :  { %v1786_v52 = vmul.f32 %v2905_v2, %v1769_v38  ;;  %vm1791_vm6 = vweird.f32 %v2905_v2 }
 0xef9   :  { %vm1792_vm8 = vmor %vm1790_vm1, %vm1791_vm6 }
 0xefa   :  { %v1787_v21 = vsub.f32 1.0, %v1786_v52 }
 0xefc   :  { %v1788_v19 = vmul.f32 %v2905_v2, %v1787_v21  ;;  %v2688_v21 = vld [vmem:[%s3757_s5] sm:$0xff] }
 0xefe   :  { %v1789_v32 = vadd.f32 %v2905_v2, %v1788_v19 }
 0xf00   :  { %v1793_v39 = vsel %vm1792_vm8, %v2905_v2, %v1789_v32  ;;  %v2692_v2 = vld [vmem:[%s3757_s5 + $0x20] sm:$0xff]  ;;  %v2711_v32 = vld [vmem:[%s3757_s5 + $0xb8] sm:$0xff] }
 0xf01   :  { %v1798_v13 = vsel %vm1795_vm9, %v1797_v7, %v1793_v39  ;;  %2214 = vmatpush.bf16.msrb.mxu0 %v2692_v2  ;;  %2237 = vmatpush.bf16.msra.mxu2 %v2711_v32  ;;  %v2718_v39 = vld [vmem:[%s3757_s5 + $0xf0] sm:$0xff] }
 0xf02   :  { %2251 = vmatpush.bf16.msra.mxu3 %v2718_v39 }
 0xf05   :  { %2215 = vmatpush.bf16.msrb.mxu0 %v2691_v41  ;;  %2238 = vmatpush.bf16.msra.mxu2 %v2710_v34 }
 0xf09   :  { %2216 = vmatpush.bf16.msrb.mxu0 %v2690_v36 }
 0xf3e   :  { %v1727_v11 = vpop.permute.xlu2 %1726 }
 0xf3f   :  { %v1729_v8 = vmul.f32 %v1727_v11, %v1710_v18  ;;  %v2689_v18 = vld [vmem:[%s3757_s5 + $0x8] sm:$0xff] }
 0xf40   :  { %v2697_v11 = vld [vmem:[%s3757_s5 + $0x48] sm:$0xff]  ;;  %2217 = vmatpush.bf16.msrb.mxu0 %v2689_v18 }
 0xf41   :  { %v1730_v28 = vpack.c.bf16 %v1729_v8, %v1729_v8 }
 0xf43   :  { %2509 = vmatmul.msk.bf16.vlgmr.msra.gmra.mxu0 %vm218_vm10, %v1730_v28  ;;  %2510 = vmatmul.msk.bf16.vlgmr.msra.gmra.mxu1 %vm218_vm10, %v1730_v28  ;;  %1731 = vst.msk [vmem:[#allocation3 + $0xc] sm:$0xf] %vm499_vm7, %v1730_v28  ;;  %v2696_v28 = vld [vmem:[%s3757_s5 + $0x40] sm:$0xff] }
 0xf44   :  { %2218 = vmatpush.bf16.msrb.mxu0 %v2688_v21 }
 0xf4e   :  { %v1815_v56 = vpop.permute.xlu1 %1814 }
 0xf4f   :  { %v1817_v15 = vmul.f32 %v1815_v56, %v1798_v13 }
 0xf51   :  { %v1818_v14 = vpack.c.bf16 %v1817_v15, %v1817_v15  ;;  %v2709_v15 = vld [vmem:[%s3757_s5 + $0xa8] sm:$0xff] }
 0xf52   :  { %2239 = vmatpush.bf16.msra.mxu2 %v2709_v15 }
 0xf53   :  { %2511 = vmatmul.msk.bf16.vlgmr.msrb.gmra.mxu2 %vm218_vm10, %v1818_v14  ;;  %2512 = vmatmul.msk.bf16.vlgmr.msrb.gmra.mxu3 %vm218_vm10, %v1818_v14  ;;  %v2717_v14 = vld [vmem:[%s3757_s5 + $0xe8] sm:$0xff] }
 0xf54   :  { %2252 = vmatpush.bf16.msra.mxu3 %v2717_v14 }
 0xfc0   :  { %v1831_v45 = vpop.f32.mrf.mxu0  ;;  %v1844_v62 = vpop.f32.mrf.mxu1 }
 0xfc8   :  { %v1833_v0 = vpop.f32.mrf.mxu0  ;;  %v1846_v23 = vpop.f32.mrf.mxu1 }
 0xfc9   :  { %v2708_v0 = vld [vmem:[%s3757_s5 + $0xa0] sm:$0xff] }
 0xfca   :  { %v2716_v23 = vld [vmem:[%s3757_s5 + $0xe0] sm:$0xff]  ;;  %2240 = vmatpush.bf16.msra.mxu2 %v2708_v0 }
 0xfcb   :  { %2253 = vmatpush.bf16.msra.mxu3 %v2716_v23 }
 0xfd6   :  { %v1860_v29 = vpop.f32.mrf.mxu2  ;;  %v1873_v9 = vpop.f32.mrf.mxu3 }
 0xfd7   :  { %v1861_v55 = vadd.f32 %v1860_v29, %v1831_v45  ;;  %v1874_v31 = vadd.f32 %v1873_v9, %v1844_v62 }
 0xfd9   :  { %2906 = vtanh.f32 %v1874_v31  ;;  %v2513_v42 = vmul.f32 -1.442695, %v1861_v55  ;;  %v2514_v27 = vmul.f32 -1.442695, %v1874_v31 }
 0xfdb   :  { %2908 = vpow2.f32 %v2513_v42 }
 0xfde   :  { %v1862_v12 = vpop.f32.mrf.mxu2  ;;  %v1875_v22 = vpop.f32.mrf.mxu3 }
 0xfdf   :  { %v2907_v24 = vpop.eup %2906  ;;  %v2707_v12 = vld [vmem:[%s3757_s5 + $0x98] sm:$0xff] }
 0xfe0   :  { %1918 = vrot.lane.b32.xlu0 %v2907_v24, %s2919_s2  ;;  %v2715_v22 = vld [vmem:[%s3757_s5 + $0xd8] sm:$0xff]  ;;  %2241 = vmatpush.bf16.msra.mxu2 %v2707_v12 }
 0xfe1   :  { %v2909_v54 = vpop.eup %2908  ;;  %2254 = vmatpush.bf16.msra.mxu3 %v2715_v22 }
 0xfe2   :  { %v1883_v37 = vadd.f32 1.0, %v2909_v54 }
 0xfe4   :  { %2910 = vrcp.f32 %v1883_v37  ;;  %v1896_v61 = vand.u32 2147483648, %v1883_v37  ;;  %vm1890_vm11 = vweird.f32 %v1883_v37  ;;  %v1894_v63 = vand.u32 2147483647, %v1883_v37 }
 0xfe6   :  { %vm1895_vm13 = vcmp.eq.f32.partialorder %v1894_v63, 8.507059e+37  ;;  %v2704_v63 = vld [vmem:[%s3757_s5 + $0x80] sm:$0xff] }
 0xfe8   :  { %1525 = vrot.lane.b32.xlu0 %v3583_v16, %s2919_s2  ;;  %v1897_v16 = vor.u32 1.1754944e-38, %v1896_v61  ;;  %v2713_v61 = vld [vmem:[%s3757_s5 + $0xc8] sm:$0xff] }
 0xfea   :  { %v2911_v57 = vpop.eup %2910 }
 0xfeb   :  { %v1886_v26 = vmul.f32 %v2911_v57, %v1883_v37  ;;  %vm1891_vm7 = vweird.f32 %v2911_v57 }
 0xfec   :  { %vm1892_vm12 = vmor %vm1890_vm11, %vm1891_vm7 }
 0xfed   :  { %v1887_v47 = vsub.f32 1.0, %v1886_v26 }
 0xfef   :  { %v1888_v5 = vmul.f32 %v2911_v57, %v1887_v47  ;;  %v2706_v47 = vld [vmem:[%s3757_s5 + $0x90] sm:$0xff] }
 0xff0   :  { %1115 = vrot.lane.b32.xlu0 %v3472_v1, %s2919_s2  ;;  %2242 = vmatpush.bf16.msra.mxu2 %v2706_v47 }
 0xff1   :  { %v1889_v30 = vadd.f32 %v2911_v57, %v1888_v5  ;;  %v2714_v5 = vld [vmem:[%s3757_s5 + $0xd0] sm:$0xff] }
 0xff2   :  { %2255 = vmatpush.bf16.msra.mxu3 %v2714_v5 }
 0xff3   :  { %v1893_v59 = vsel %vm1892_vm12, %v2911_v57, %v1889_v30  ;;  %v2705_v30 = vld [vmem:[%s3757_s5 + $0x88] sm:$0xff] }
 0xff4   :  { %v1898_v1 = vsel %vm1895_vm13, %v1897_v16, %v1893_v59  ;;  %2243 = vmatpush.bf16.msra.mxu2 %v2705_v30  ;;  %v2712_v59 = vld [vmem:[%s3757_s5 + $0xc0] sm:$0xff] }
 0xff5   :  { %v1916_v3 = vmul.f32 %v1898_v1, %v3613_v6  ;;  %v2700_v6 = vld [vmem:[%s3757_s5 + $0x60] sm:$0xff] }
 0xff6   :  { %2227 = vmatpush.bf16.msrb.mxu1 %v2700_v6  ;;  %2256 = vmatpush.bf16.msra.mxu3 %v2713_v61 }
 0xff8   :  { %2244 = vmatpush.bf16.msra.mxu2 %v2704_v63 }
 0xffa   :  { %2257 = vmatpush.bf16.msra.mxu3 %v2712_v59 }
0x1052   :  { %v1919_v20 = vpop.permute.xlu0 %1918 }
0x1053   :  { %v1921_v51 = vmul.f32 %v1919_v20, %v1898_v1  ;;  %v2723_v20 = vld [vmem:[%s3758_s6 + $0x18] sm:$0xff]  ;;  %v2722_v1 = vld [vmem:[%s3758_s6 + $0x10] sm:$0xff] }
0x1054   :  { %2304 = vmatpush.bf16.msra.mxu0 %v2723_v20 }
0x1055   :  { %1923 = vrot.lane.b32.xlu1 %v1921_v51, %s2919_s2 }
0x1058   :  { %2305 = vmatpush.bf16.msra.mxu0 %v2722_v1 }
0x105a   :  { %v1526_v48 = vpop.permute.xlu0 %1525 }
0x105b   :  { %1528 = vst.msk [vmem:[#allocation3 + $0x8] sm:$0xf] %vm707_vm14, %v1526_v48 }
0x1062   :  { %v1116_v4 = vpop.permute.xlu0 %1115 }
0x1063   :  { %1118 = vst.msk [vmem:[#allocation3 + $0x4] sm:$0xf] %vm707_vm14, %v1116_v4 }
0x10c7   :  { %v1924_v10 = vpop.permute.xlu1 %1923 }
0x10c8   :  { %v1926_v25 = vadd.f32 %v1924_v10, %v1916_v3  ;;  %v2721_v10 = vld [vmem:[%s3758_s6 + $0x8] sm:$0xff] }
0x10c9   :  { %2306 = vmatpush.bf16.msra.mxu0 %v2721_v10 }
0x10ca   :  { %2912 = vtanh.f32 %v1926_v25  ;;  %v2720_v25 = vld [vmem:[%s3758_s6] sm:$0xff] }
0x10cb   :  { %2914 = vpow2.f32 %v2514_v27 }
0x10cd   :  { %2307 = vmatpush.bf16.msra.mxu0 %v2720_v25 }
0x10d0   :  { %v2913_v38 = vpop.eup %2912 }
0x10d1   :  { %1929 = vrot.lane.b32.xlu2 %v2913_v38, %s2919_s2  ;;  %v2915_v17 = vpop.eup %2914 }
0x10d2   :  { %v1884_v35 = vadd.f32 1.0, %v2915_v17 }
0x10d4   :  { %2916 = vrcp.f32 %v1884_v35  ;;  %v1911_v13 = vand.u32 2147483648, %v1884_v35  ;;  %vm1905_vm0 = vweird.f32 %v1884_v35  ;;  %v1909_v56 = vand.u32 2147483647, %v1884_v35 }
0x10d6   :  { %v1912_v62 = vor.u32 1.1754944e-38, %v1911_v13  ;;  %vm1910_vm3 = vcmp.eq.f32.partialorder %v1909_v56, 8.507059e+37 }
0x10d9   :  { %704 = vrot.lane.b32.xlu2 %v3359_v44, %s2919_s2  ;;  %v2699_v44 = vld [vmem:[%s3757_s5 + $0x58] sm:$0xff] }
0x10da   :  { %2228 = vmatpush.bf16.msrb.mxu1 %v2699_v44  ;;  %v2917_v52 = vpop.eup %2916 }
0x10db   :  { %v1901_v53 = vmul.f32 %v2917_v52, %v1884_v35  ;;  %vm1906_vm15 = vweird.f32 %v2917_v52 }
0x10dc   :  { %vm1907_vm2 = vmor %vm1905_vm0, %vm1906_vm15 }
0x10dd   :  { %v1902_v8 = vsub.f32 1.0, %v1901_v53 }
0x10de   :  { %2229 = vmatpush.bf16.msrb.mxu1 %v2698_v43 }
0x10df   :  { %v1903_v19 = vmul.f32 %v2917_v52, %v1902_v8 }
0x10e1   :  { %v1904_v7 = vadd.f32 %v2917_v52, %v1903_v19 }
0x10e2   :  { %2230 = vmatpush.bf16.msrb.mxu1 %v2697_v11 }
0x10e3   :  { %v1908_v45 = vsel %vm1907_vm2, %v2917_v52, %v1904_v7 }
0x10e4   :  { %v1913_v29 = vsel %vm1910_vm3, %v1912_v62, %v1908_v45 }
0x10e6   :  { %2231 = vmatpush.bf16.msrb.mxu1 %v2696_v28 }
0x112b   :  { %v1930_v9 = vpop.permute.xlu2 %1929 }
0x112c   :  { %v1932_v55 = vmul.f32 %v1930_v9, %v1913_v29 }
0x112e   :  { %v1933_v31 = vpack.c.bf16 %v1932_v55, %v1932_v55 }
0x1130   :  { %1935 = vrot.lane.b32.xlu1 %v1933_v31, %s2919_s2 }
0x1133   :  { %v705_v24 = vpop.permute.xlu2 %704 }
0x1134   :  { %708 = vst.msk [vmem:[#allocation3] sm:$0xf] %vm707_vm14, %v705_v24 }
0x113b   :  { %v1939_v42 = vld [vmem:[#allocation3] sm:$0xff] }
0x113c   :  { %v2007_v54 = vunpack.c.l.b16 %v1939_v42  ;;  %v2008_v37 = vunpack.c.h.b16 %v1939_v42 }
0x113e   :  { %v2011_v57 = vpack.c.b16 %v2007_v54, %v2007_v54  ;;  %v2012_v26 = vpack.c.b16 %v2008_v37, %v2008_v37 }
0x1140   :  { %2219 = vmatmul.bf16.vlgmr.msrb.gmra.mxu0 %v2011_v57  ;;  %2232 = vmatmul.bf16.vlgmr.msrb.gmra.mxu1 %v2012_v26 }
0x11a2   :  { %v1936_v16 = vpop.permute.xlu1 %1935 }
0x11a3   :  { %1938 = vst.msk [vmem:[#allocation3 + $0xc] sm:$0xf] %vm707_vm14, %v1936_v16 }
0x11aa   :  { %v1940_v51 = vld [vmem:[#allocation3 + $0x8] sm:$0xff] }
0x11ab   :  { %v2009_v48 = vunpack.c.l.b16 %v1940_v51  ;;  %v2010_v4 = vunpack.c.h.b16 %v1940_v51 }
0x11ad   :  { %v2013_v40 = vpack.c.b16 %v2009_v48, %v2009_v48  ;;  %v2014_v60 = vpack.c.b16 %v2010_v4, %v2010_v4 }
0x11af   :  { %2245 = vmatmul.bf16.vlgmr.msra.gmra.mxu2 %v2013_v40  ;;  %2258 = vmatmul.bf16.vlgmr.msra.gmra.mxu3 %v2014_v60 }
0x11bd   :  { %v2220_v33 = vpop.f32.mrf.mxu0  ;;  %v2233_v58 = vpop.f32.mrf.mxu1 }
0x11be   :  { %v2234_v49 = vadd.f32 %v2233_v58, %v2220_v33 }
0x11c5   :  { %v2222_v46 = vpop.f32.mrf.mxu0  ;;  %v2235_v3 = vpop.f32.mrf.mxu1 }
0x1232   :  { %v2246_v38 = vpop.f32.mrf.mxu2  ;;  %v2259_v27 = vpop.f32.mrf.mxu3 }
0x1233   :  { %v2247_v17 = vadd.f32 %v2246_v38, %v2234_v49 }
0x1235   :  { %v2260_v35 = vadd.f32 %v2259_v27, %v2247_v17 }
0x1237   :  { %v2263_v2 = vmax.f32 %v2260_v35, 0.0 }
0x1239   :  { %v2264_v6 = vpack.c.bf16 %v2263_v2, %v2263_v2 }
0x123a   :  { %v2248_v41 = vpop.f32.mrf.mxu2  ;;  %v2261_v44 = vpop.f32.mrf.mxu3 }
0x123b   :  { %2659 = vmatmul.msk.bf16.vlgmr.msra.gmra.mxu0 %vm218_vm10, %v2264_v6 }
0x12b8   :  { %v2309_v36 = vpop.f32.mrf.mxu0 }
0x12b9   :  { %2314 = vst.msk [vmem:[%s3759_s7] sm:$0x3] %vm2313_vm4, %v2309_v36 }
0x12c0   :  { %v2311_v43 = vpop.f32.mrf.mxu0 }

</bundles_post_ra>
